<compile_context>
chip_gen: v7x
topology: tpu7x:2x2x1
jax: 0.10.0
libtpu: 0.0.40
codegen_flags: <defaults>
</compile_context>

<pallas_src>
import functools

import jax
import jax.numpy as jnp
import numpy as np
from jax import lax
from jax.experimental import pallas as pl
from jax.experimental.pallas import tpu as pltpu


def _sparse_coder_kernel(g_ref, b_ref, scal_ref, a_ref, y_ref, *,
                         max_iter: int, check_every: int,
                         use_fista: bool, use_bf16_mxu: bool):
    """FISTA/ISTA loop in the transposed (atoms-on-sublanes) layout.

    g_ref   : (Np, Np) VMEM   G   = I - (1/L) Phi Phi^T     (zero-padded)
    b_ref   : (Np, Mp) VMEM   b^T = (1/L) Phi x_flat^T      (zero-padded)
    scal_ref: (2,)     SMEM   [lmbda/L, tolerance^2]
    a_ref   : (Np, Mp) VMEM   output codes A^T (updated in place every step)
    y_ref   : (Np, Mp) VMEM   FISTA auxiliary iterate y^T (scratch)
    """
    G = g_ref[...]
    b = b_ref[...]
    thr = scal_ref[0]                       # lmbda / L
    tol2 = scal_ref[1]                      # tolerance ** 2

    G_mm = G.astype(jnp.bfloat16) if use_bf16_mxu else G
    # Loop-invariant broadcast of the soft threshold, hoisted out of the loop.
    thr_b = jnp.full(b.shape, thr, dtype=jnp.float32)
    sign_mask = jnp.uint32(0x80000000)

    # Zero-init state in place (A = 0, y = 0).
    a_ref[...] = jnp.zeros_like(a_ref)
    y_ref[...] = jnp.zeros_like(y_ref)

    def fista_step(t, want_diff2):
        """One ISTA/FISTA step; mutates a_ref / y_ref in place."""
        A_prev = a_ref[...]
        yv = y_ref[...]
        yv_mm = yv.astype(jnp.bfloat16) if use_bf16_mxu else yv
        # grad^T = G @ y^T + b^T : one small well-shaped MXU matmul per step.
        grad = jnp.dot(G_mm, yv_mm, preferred_element_type=jnp.float32) + b
        # Soft threshold: copysign(max(|g| - thr, 0), g) via sign-bit transplant.
        mag = jnp.maximum(jnp.abs(grad) - thr_b, 0.0)
        signs = pltpu.bitcast(grad, jnp.uint32) & sign_mask
        A_new = pltpu.bitcast(pltpu.bitcast(mag, jnp.uint32) | signs,
                              jnp.float32)
        d = A_new - A_prev                   # reused for momentum and the norm
        if use_fista:
            t_new = 0.5 * (1.0 + jnp.sqrt(1.0 + 4.0 * t * t))
            y_new = A_new + ((t - 1.0) / t_new) * d
        else:
            t_new = t
            y_new = A_new
        a_ref[...] = A_new
        y_ref[...] = y_new
        diff2 = jnp.sum(d * d) if want_diff2 else None
        return t_new, diff2

    K = max(1, min(int(check_every), max(int(max_iter), 1)))
    n_chunks = max_iter // K
    remainder = max_iter - n_chunks * K

    def cond(carry):
        ci, done, _t = carry
        return jnp.logical_and(ci < n_chunks, jnp.logical_not(done))

    def body(carry):
        ci, _done, t = carry
        diff2 = jnp.float32(jnp.inf)
        for s in range(K):                   # statically unrolled sub-steps
            t, d2 = fista_step(t, want_diff2=(s == K - 1))
            if d2 is not None:
                diff2 = d2
        return ci + 1, diff2 < tol2, t

    carry0 = (jnp.int32(0), jnp.zeros((), jnp.bool_), jnp.float32(1.0))
    _, done, t_out = lax.while_loop(cond, body, carry0)

    if remainder > 0:                        # absent when check_every | max_iter
        @pl.when(jnp.logical_not(done))
        def _():
            t = t_out
            for _ in range(remainder):
                t, _ = fista_step(t, want_diff2=False)


def _vmem_limit_bytes(Np: int, Mp: int) -> int:
    """Accounting-based scoped-VMEM budget, capped per TPU generation."""
    state = Np * Mp * 4                      # one (Np, Mp) f32 array
    g_bytes = Np * max(Np, 128) * 4          # G with internal lane padding
    # Resident: G + b^T + A^T(out) + y^T(scratch) + ~4 in-flight temporaries.
    need = g_bytes + 7 * state + (2 << 20)
    try:
        phys = int(pltpu.get_tpu_info().vmem_capacity_bytes)
    except Exception:
        phys = 64 << 20                      # conservative fallback (v7x per-TC)
    cap = (phys * 7) // 8                    # ~56 MiB v7x, ~112 MiB v5e/v6e
    return int(max(min(need, cap), 32 << 20))


def sparse_coder_forward(Phi, x, theta=None, *, algorithm="fista",
                         max_iter=100, tolerance=1e-6, lmbda=0.1,
                         check_every=4, use_bf16_mxu=False):
    """JAX/Pallas equivalent of SparseCoder.forward(Phi, x, theta)."""
    lmbda_val = lmbda if theta is None else theta
    B, C, H, W = x.shape
    N = Phi.shape[0]
    M = B * H * W

    Phi = jnp.asarray(Phi, jnp.float32)
    x = jnp.asarray(x, jnp.float32)

    # Legacy torch.norm(Phi.T @ Phi, 2) with dim=None is the *flattened*
    # vector 2-norm (== Frobenius norm), not the spectral norm.
    gram_c = Phi.T @ Phi                                     # (C, C)
    L = jnp.sqrt(jnp.sum(gram_c * gram_c))
    inv_L = 1.0 / L

    # Transposed one-time reformulation constants:  grad^T = G @ y^T + b^T.
    G = jnp.eye(N, dtype=jnp.float32) - inv_L * (Phi @ Phi.T)          # (N, N)
    bT = inv_L * jnp.einsum("nc,bchw->nbhw", Phi, x).reshape(N, M)     # (N, M)

    # Atoms on sublanes (pad to 8 for f32), pixels on lanes (pad to 128).
    # Zero-padded atom rows / pixel lanes stay exactly zero through the
    # soft-threshold and contribute nothing to the convergence norm.
    Np = ((N + 7) // 8) * 8
    Mp = ((M + 127) // 128) * 128
    if Np != N:
        G = jnp.pad(G, ((0, Np - N), (0, Np - N)))
        bT = jnp.pad(bT, ((0, Np - N), (0, 0)))
    if Mp != M:
        bT = jnp.pad(bT, ((0, 0), (0, Mp - M)))

    scalars = jnp.stack([
        jnp.asarray(lmbda_val, jnp.float32) * inv_L,   # soft threshold lmbda/L
        jnp.asarray(tolerance, jnp.float32) ** 2,      # squared tolerance
    ]).astype(jnp.float32)

    kernel = functools.partial(
        _sparse_coder_kernel,
        max_iter=int(max_iter),
        check_every=int(check_every),
        use_fista=(algorithm.lower() == "fista"),
        use_bf16_mxu=bool(use_bf16_mxu),
    )

    # TODO(synk): v7x dual-TensorCore split of M (pltpu.create_tensorcore_mesh
    # + a shared-scratch cross-core diff2 reduction) is skipped so the
    # convergence break stays a single *global* Frobenius decision, exactly
    # matching the PyTorch reference.
    # TODO(synk): add an M-tiled / emit_pipeline streaming fallback for
    # problem sizes whose (Np, Mp) state no longer fits a single core's VMEM.
    AT = pl.pallas_call(
        kernel,
        out_shape=jax.ShapeDtypeStruct((Np, Mp), jnp.float32),
        in_specs=[
            pl.BlockSpec(memory_space=pltpu.MemorySpace.VMEM),   # G
            pl.BlockSpec(memory_space=pltpu.MemorySpace.VMEM),   # b^T
            pl.BlockSpec(memory_space=pltpu.MemorySpace.SMEM),   # [thr, tol^2]
        ],
        out_specs=pl.BlockSpec(memory_space=pltpu.MemorySpace.VMEM),
        scratch_shapes=[pltpu.VMEM((Np, Mp), jnp.float32)],      # y^T
        compiler_params=pltpu.CompilerParams(
            vmem_limit_bytes=_vmem_limit_bytes(Np, Mp)),
    )(G, bT, scalars)

    # Unpad; out[b, n, h, w] = A^T[n, b*H*W + h*W + w].
    AT = AT[:N, :M]
    return jnp.transpose(AT.reshape(N, B, H, W), (1, 0, 2, 3))


def _reference_sparse_coder(Phi, x, theta=None, algorithm="fista",
                            max_iter=100, tolerance=1e-6, lmbda=0.1):
    """Pure NumPy mirror of the PyTorch forward (for verification)."""
    Phi = np.asarray(Phi, np.float32)
    x = np.asarray(x, np.float32)
    lmb = lmbda if theta is None else theta
    B, C, H, W = x.shape
    N = Phi.shape[0]
    x_flat = x.reshape(B, C, H * W).transpose(0, 2, 1)
    A = np.zeros((B, H * W, N), np.float32)
    L = np.linalg.norm((Phi.T @ Phi).ravel(), 2)
    t = 1.0
    y = A.copy()
    PhiT = Phi.T
    for _ in range(max_iter):
        A_prev = A.copy()
        residual = y @ Phi - x_flat
        grad = y - (1.0 / L) * (residual @ PhiT)
        A_new = np.sign(grad) * np.maximum(np.abs(grad) - lmb / L, 0.0)
        if algorithm == "fista":
            t_new = (1.0 + np.sqrt(1.0 + 4.0 * t * t)) / 2.0
            y = A_new + (t - 1.0) / t_new * (A_new - A_prev)
            t = t_new
        else:
            y = A_new
        A = A_new
        if np.linalg.norm((A - A_prev).ravel()) < tolerance:
            break
    return A.transpose(0, 2, 1).reshape(B, N, H, W)


if __name__ == "__main__":
    key = jax.random.PRNGKey(0)
    k_phi, k_x = jax.random.split(key)

    B, C, H, W = 2, 4, 16, 16
    n_atoms = 32

    # Deterministic "parameter" init: unit-norm dictionary atoms.
    Phi = jax.random.normal(k_phi, (n_atoms, C), jnp.float32)
    Phi = Phi / jnp.linalg.norm(Phi, axis=1, keepdims=True)
    x = jax.random.normal(k_x, (B, C, H, W), jnp.float32)

    out = sparse_coder_forward(Phi, x, theta=None, algorithm="fista",
                               max_iter=100, tolerance=1e-6, lmbda=0.1)
    out = jax.block_until_ready(out)

    assert out.shape == (B, n_atoms, H, W), out.shape
    ref = _reference_sparse_coder(np.asarray(Phi), np.asarray(x))
    np.testing.assert_allclose(np.asarray(out), ref, rtol=5e-3, atol=5e-3)

    print("KERNEL_OK")
</pallas_src>

<mosaic_0001>
module attributes {stable_mosaic.version = 11 : i64} {
  func.func @_sparse_coder_kernel(%arg0: memref<32x32xf32, #tpu.memory_space<vmem>>, %arg1: memref<32x512xf32, #tpu.memory_space<vmem>>, %arg2: memref<2xf32, #tpu.memory_space<smem>>, %arg3: memref<32x512xf32, #tpu.memory_space<vmem>>, %arg4: memref<32x512xf32, #tpu.memory_space<vmem>>) attributes {dimension_semantics = [], scalar_prefetch = 0 : i64, scratch_operands = 1 : i64, tpu.core_type = #tpu.core_type<tc>} {
    %c0 = arith.constant 0 : index
    %c0_0 = arith.constant 0 : index
    %0 = vector.load %arg0[%c0, %c0_0] : memref<32x32xf32, #tpu.memory_space<vmem>>, vector<32x32xf32>
    %c0_1 = arith.constant 0 : index
    %c0_2 = arith.constant 0 : index
    %1 = vector.load %arg1[%c0_1, %c0_2] : memref<32x512xf32, #tpu.memory_space<vmem>>, vector<32x512xf32>
    %c0_3 = arith.constant 0 : index
    %2 = memref.load %arg2[%c0_3] : memref<2xf32, #tpu.memory_space<smem>>
    %c1 = arith.constant 1 : index
    %3 = memref.load %arg2[%c1] : memref<2xf32, #tpu.memory_space<smem>>
    %4 = vector.broadcast %2 : f32 to vector<32x512xf32>
    %cst = arith.constant 0.000000e+00 : f32
    %5 = vector.broadcast %cst : f32 to vector<32x512xf32>
    %c0_4 = arith.constant 0 : index
    %c0_5 = arith.constant 0 : index
    %6 = vector.load %arg3[%c0_4, %c0_5] : memref<32x512xf32, #tpu.memory_space<vmem>>, vector<32x512xf32>
    tpu.vector_store %arg3[%c0_4, %c0_5], %5 {strides = array<i32>} : memref<32x512xf32, #tpu.memory_space<vmem>>, vector<32x512xf32>,
    %cst_6 = arith.constant 0.000000e+00 : f32
    %7 = vector.broadcast %cst_6 : f32 to vector<32x512xf32>
    %c0_7 = arith.constant 0 : index
    %c0_8 = arith.constant 0 : index
    %8 = vector.load %arg4[%c0_7, %c0_8] : memref<32x512xf32, #tpu.memory_space<vmem>>, vector<32x512xf32>
    tpu.vector_store %arg4[%c0_7, %c0_8], %7 {strides = array<i32>} : memref<32x512xf32, #tpu.memory_space<vmem>>, vector<32x512xf32>,
    %c-2147483648_i32 = arith.constant -2147483648 : i32
    %c0_i32 = arith.constant 0 : i32
    %false = arith.constant false
    %cst_9 = arith.constant 1.000000e+00 : f32
    %9:3 = scf.while (%arg5 = %c0_i32, %arg6 = %false, %arg7 = %cst_9) : (i32, i1, f32) -> (i32, i1, f32) {
      %c25_i32 = arith.constant 25 : i32
      %10 = arith.cmpi slt, %arg5, %c25_i32 : i32
      %true = arith.constant true
      %11 = arith.xori %arg6, %true : i1
      %12 = arith.andi %10, %11 : i1
      scf.condition(%12) %arg5, %arg6, %arg7 : i32, i1, f32
    } do {
    ^bb0(%arg5: i32, %arg6: i1, %arg7: f32):
      %c0_10 = arith.constant 0 : index
      %c0_11 = arith.constant 0 : index
      %10 = vector.load %arg3[%c0_10, %c0_11] : memref<32x512xf32, #tpu.memory_space<vmem>>, vector<32x512xf32>
      %c0_12 = arith.constant 0 : index
      %c0_13 = arith.constant 0 : index
      %11 = vector.load %arg4[%c0_12, %c0_13] : memref<32x512xf32, #tpu.memory_space<vmem>>, vector<32x512xf32>
      %cst_14 = arith.constant dense<0.000000e+00> : vector<32x512xf32>
      %12 = tpu.matmul %0, %11, %cst_14 {dimension_numbers = #tpu.dot_dimension_numbers<[1], [0], [0], [1], [0, 0, 1, 1], [], []>} : vector<32x32xf32>, vector<32x512xf32>, vector<32x512xf32> -> vector<32x512xf32>
      %13 = arith.addf %12, %1 : vector<32x512xf32>
      %14 = math.absf %13 : vector<32x512xf32>
      %15 = arith.subf %14, %4 : vector<32x512xf32>
      %cst_15 = arith.constant 0.000000e+00 : f32
      %16 = vector.broadcast %cst_15 : f32 to vector<32x512xf32>
      %17 = arith.maximumf %15, %16 : vector<32x512xf32>
      %18 = tpu.bitcast %13 : vector<32x512xf32> -> vector<32x512xi32>
      %19 = vector.broadcast %c-2147483648_i32 : i32 to vector<32x512xi32>
      %20 = arith.andi %18, %19 : vector<32x512xi32>
      %21 = tpu.bitcast %17 : vector<32x512xf32> -> vector<32x512xi32>
      %22 = arith.ori %21, %20 : vector<32x512xi32>
      %23 = tpu.bitcast %22 : vector<32x512xi32> -> vector<32x512xf32>
      %24 = arith.subf %23, %10 : vector<32x512xf32>
      %cst_16 = arith.constant 4.000000e+00 : f32
      %25 = arith.mulf %cst_16, %arg7 : f32
      %26 = arith.mulf %25, %arg7 : f32
      %cst_17 = arith.constant 1.000000e+00 : f32
      %27 = arith.addf %cst_17, %26 : f32
      %28 = math.sqrt %27 : f32
      %cst_18 = arith.constant 1.000000e+00 : f32
      %29 = arith.addf %cst_18, %28 : f32
      %cst_19 = arith.constant 5.000000e-01 : f32
      %30 = arith.mulf %cst_19, %29 : f32
      %cst_20 = arith.constant 1.000000e+00 : f32
      %31 = arith.subf %arg7, %cst_20 : f32
      %32 = arith.divf %31, %30 : f32
      %33 = vector.broadcast %32 : f32 to vector<32x512xf32>
      %34 = arith.mulf %33, %24 : vector<32x512xf32>
      %35 = arith.addf %23, %34 : vector<32x512xf32>
      %c0_21 = arith.constant 0 : index
      %c0_22 = arith.constant 0 : index
      %36 = vector.load %arg3[%c0_21, %c0_22] : memref<32x512xf32, #tpu.memory_space<vmem>>, vector<32x512xf32>
      tpu.vector_store %arg3[%c0_21, %c0_22], %23 {strides = array<i32>} : memref<32x512xf32, #tpu.memory_space<vmem>>, vector<32x512xf32>,
      %c0_23 = arith.constant 0 : index
      %c0_24 = arith.constant 0 : index
      %37 = vector.load %arg4[%c0_23, %c0_24] : memref<32x512xf32, #tpu.memory_space<vmem>>, vector<32x512xf32>
      tpu.vector_store %arg4[%c0_23, %c0_24], %35 {strides = array<i32>} : memref<32x512xf32, #tpu.memory_space<vmem>>, vector<32x512xf32>,
      %c0_25 = arith.constant 0 : index
      %c0_26 = arith.constant 0 : index
      %38 = vector.load %arg3[%c0_25, %c0_26] : memref<32x512xf32, #tpu.memory_space<vmem>>, vector<32x512xf32>
      %c0_27 = arith.constant 0 : index
      %c0_28 = arith.constant 0 : index
      %39 = vector.load %arg4[%c0_27, %c0_28] : memref<32x512xf32, #tpu.memory_space<vmem>>, vector<32x512xf32>
      %cst_29 = arith.constant dense<0.000000e+00> : vector<32x512xf32>
      %40 = tpu.matmul %0, %39, %cst_29 {dimension_numbers = #tpu.dot_dimension_numbers<[1], [0], [0], [1], [0, 0, 1, 1], [], []>} : vector<32x32xf32>, vector<32x512xf32>, vector<32x512xf32> -> vector<32x512xf32>
      %41 = arith.addf %40, %1 : vector<32x512xf32>
      %42 = math.absf %41 : vector<32x512xf32>
      %43 = arith.subf %42, %4 : vector<32x512xf32>
      %cst_30 = arith.constant 0.000000e+00 : f32
      %44 = vector.broadcast %cst_30 : f32 to vector<32x512xf32>
      %45 = arith.maximumf %43, %44 : vector<32x512xf32>
      %46 = tpu.bitcast %41 : vector<32x512xf32> -> vector<32x512xi32>
      %47 = vector.broadcast %c-2147483648_i32 : i32 to vector<32x512xi32>
      %48 = arith.andi %46, %47 : vector<32x512xi32>
      %49 = tpu.bitcast %45 : vector<32x512xf32> -> vector<32x512xi32>
      %50 = arith.ori %49, %48 : vector<32x512xi32>
      %51 = tpu.bitcast %50 : vector<32x512xi32> -> vector<32x512xf32>
      %52 = arith.subf %51, %38 : vector<32x512xf32>
      %cst_31 = arith.constant 4.000000e+00 : f32
      %53 = arith.mulf %cst_31, %30 : f32
      %54 = arith.mulf %53, %30 : f32
      %cst_32 = arith.constant 1.000000e+00 : f32
      %55 = arith.addf %cst_32, %54 : f32
      %56 = math.sqrt %55 : f32
      %cst_33 = arith.constant 1.000000e+00 : f32
      %57 = arith.addf %cst_33, %56 : f32
      %cst_34 = arith.constant 5.000000e-01 : f32
      %58 = arith.mulf %cst_34, %57 : f32
      %cst_35 = arith.constant 1.000000e+00 : f32
      %59 = arith.subf %30, %cst_35 : f32
      %60 = arith.divf %59, %58 : f32
      %61 = vector.broadcast %60 : f32 to vector<32x512xf32>
      %62 = arith.mulf %61, %52 : vector<32x512xf32>
      %63 = arith.addf %51, %62 : vector<32x512xf32>
      %c0_36 = arith.constant 0 : index
      %c0_37 = arith.constant 0 : index
      %64 = vector.load %arg3[%c0_36, %c0_37] : memref<32x512xf32, #tpu.memory_space<vmem>>, vector<32x512xf32>
      tpu.vector_store %arg3[%c0_36, %c0_37], %51 {strides = array<i32>} : memref<32x512xf32, #tpu.memory_space<vmem>>, vector<32x512xf32>,
      %c0_38 = arith.constant 0 : index
      %c0_39 = arith.constant 0 : index
      %65 = vector.load %arg4[%c0_38, %c0_39] : memref<32x512xf32, #tpu.memory_space<vmem>>, vector<32x512xf32>
      tpu.vector_store %arg4[%c0_38, %c0_39], %63 {strides = array<i32>} : memref<32x512xf32, #tpu.memory_space<vmem>>, vector<32x512xf32>,
      %c0_40 = arith.constant 0 : index
      %c0_41 = arith.constant 0 : index
      %66 = vector.load %arg3[%c0_40, %c0_41] : memref<32x512xf32, #tpu.memory_space<vmem>>, vector<32x512xf32>
      %c0_42 = arith.constant 0 : index
      %c0_43 = arith.constant 0 : index
      %67 = vector.load %arg4[%c0_42, %c0_43] : memref<32x512xf32, #tpu.memory_space<vmem>>, vector<32x512xf32>
      %cst_44 = arith.constant dense<0.000000e+00> : vector<32x512xf32>
      %68 = tpu.matmul %0, %67, %cst_44 {dimension_numbers = #tpu.dot_dimension_numbers<[1], [0], [0], [1], [0, 0, 1, 1], [], []>} : vector<32x32xf32>, vector<32x512xf32>, vector<32x512xf32> -> vector<32x512xf32>
      %69 = arith.addf %68, %1 : vector<32x512xf32>
      %70 = math.absf %69 : vector<32x512xf32>
      %71 = arith.subf %70, %4 : vector<32x512xf32>
      %cst_45 = arith.constant 0.000000e+00 : f32
      %72 = vector.broadcast %cst_45 : f32 to vector<32x512xf32>
      %73 = arith.maximumf %71, %72 : vector<32x512xf32>
      %74 = tpu.bitcast %69 : vector<32x512xf32> -> vector<32x512xi32>
      %75 = vector.broadcast %c-2147483648_i32 : i32 to vector<32x512xi32>
      %76 = arith.andi %74, %75 : vector<32x512xi32>
      %77 = tpu.bitcast %73 : vector<32x512xf32> -> vector<32x512xi32>
      %78 = arith.ori %77, %76 : vector<32x512xi32>
      %79 = tpu.bitcast %78 : vector<32x512xi32> -> vector<32x512xf32>
      %80 = arith.subf %79, %66 : vector<32x512xf32>
      %cst_46 = arith.constant 4.000000e+00 : f32
      %81 = arith.mulf %cst_46, %58 : f32
      %82 = arith.mulf %81, %58 : f32
      %cst_47 = arith.constant 1.000000e+00 : f32
      %83 = arith.addf %cst_47, %82 : f32
      %84 = math.sqrt %83 : f32
      %cst_48 = arith.constant 1.000000e+00 : f32
      %85 = arith.addf %cst_48, %84 : f32
      %cst_49 = arith.constant 5.000000e-01 : f32
      %86 = arith.mulf %cst_49, %85 : f32
      %cst_50 = arith.constant 1.000000e+00 : f32
      %87 = arith.subf %58, %cst_50 : f32
      %88 = arith.divf %87, %86 : f32
      %89 = vector.broadcast %88 : f32 to vector<32x512xf32>
      %90 = arith.mulf %89, %80 : vector<32x512xf32>
      %91 = arith.addf %79, %90 : vector<32x512xf32>
      %c0_51 = arith.constant 0 : index
      %c0_52 = arith.constant 0 : index
      %92 = vector.load %arg3[%c0_51, %c0_52] : memref<32x512xf32, #tpu.memory_space<vmem>>, vector<32x512xf32>
      tpu.vector_store %arg3[%c0_51, %c0_52], %79 {strides = array<i32>} : memref<32x512xf32, #tpu.memory_space<vmem>>, vector<32x512xf32>,
      %c0_53 = arith.constant 0 : index
      %c0_54 = arith.constant 0 : index
      %93 = vector.load %arg4[%c0_53, %c0_54] : memref<32x512xf32, #tpu.memory_space<vmem>>, vector<32x512xf32>
      tpu.vector_store %arg4[%c0_53, %c0_54], %91 {strides = array<i32>} : memref<32x512xf32, #tpu.memory_space<vmem>>, vector<32x512xf32>,
      %c0_55 = arith.constant 0 : index
      %c0_56 = arith.constant 0 : index
      %94 = vector.load %arg3[%c0_55, %c0_56] : memref<32x512xf32, #tpu.memory_space<vmem>>, vector<32x512xf32>
      %c0_57 = arith.constant 0 : index
      %c0_58 = arith.constant 0 : index
      %95 = vector.load %arg4[%c0_57, %c0_58] : memref<32x512xf32, #tpu.memory_space<vmem>>, vector<32x512xf32>
      %cst_59 = arith.constant dense<0.000000e+00> : vector<32x512xf32>
      %96 = tpu.matmul %0, %95, %cst_59 {dimension_numbers = #tpu.dot_dimension_numbers<[1], [0], [0], [1], [0, 0, 1, 1], [], []>} : vector<32x32xf32>, vector<32x512xf32>, vector<32x512xf32> -> vector<32x512xf32>
      %97 = arith.addf %96, %1 : vector<32x512xf32>
      %98 = math.absf %97 : vector<32x512xf32>
      %99 = arith.subf %98, %4 : vector<32x512xf32>
      %cst_60 = arith.constant 0.000000e+00 : f32
      %100 = vector.broadcast %cst_60 : f32 to vector<32x512xf32>
      %101 = arith.maximumf %99, %100 : vector<32x512xf32>
      %102 = tpu.bitcast %97 : vector<32x512xf32> -> vector<32x512xi32>
      %103 = vector.broadcast %c-2147483648_i32 : i32 to vector<32x512xi32>
      %104 = arith.andi %102, %103 : vector<32x512xi32>
      %105 = tpu.bitcast %101 : vector<32x512xf32> -> vector<32x512xi32>
      %106 = arith.ori %105, %104 : vector<32x512xi32>
      %107 = tpu.bitcast %106 : vector<32x512xi32> -> vector<32x512xf32>
      %108 = arith.subf %107, %94 : vector<32x512xf32>
      %cst_61 = arith.constant 4.000000e+00 : f32
      %109 = arith.mulf %cst_61, %86 : f32
      %110 = arith.mulf %109, %86 : f32
      %cst_62 = arith.constant 1.000000e+00 : f32
      %111 = arith.addf %cst_62, %110 : f32
      %112 = math.sqrt %111 : f32
      %cst_63 = arith.constant 1.000000e+00 : f32
      %113 = arith.addf %cst_63, %112 : f32
      %cst_64 = arith.constant 5.000000e-01 : f32
      %114 = arith.mulf %cst_64, %113 : f32
      %cst_65 = arith.constant 1.000000e+00 : f32
      %115 = arith.subf %86, %cst_65 : f32
      %116 = arith.divf %115, %114 : f32
      %117 = vector.broadcast %116 : f32 to vector<32x512xf32>
      %118 = arith.mulf %117, %108 : vector<32x512xf32>
      %119 = arith.addf %107, %118 : vector<32x512xf32>
      %c0_66 = arith.constant 0 : index
      %c0_67 = arith.constant 0 : index
      %120 = vector.load %arg3[%c0_66, %c0_67] : memref<32x512xf32, #tpu.memory_space<vmem>>, vector<32x512xf32>
      tpu.vector_store %arg3[%c0_66, %c0_67], %107 {strides = array<i32>} : memref<32x512xf32, #tpu.memory_space<vmem>>, vector<32x512xf32>,
      %c0_68 = arith.constant 0 : index
      %c0_69 = arith.constant 0 : index
      %121 = vector.load %arg4[%c0_68, %c0_69] : memref<32x512xf32, #tpu.memory_space<vmem>>, vector<32x512xf32>
      tpu.vector_store %arg4[%c0_68, %c0_69], %119 {strides = array<i32>} : memref<32x512xf32, #tpu.memory_space<vmem>>, vector<32x512xf32>,
      %122 = arith.mulf %108, %108 : vector<32x512xf32>
      %123 = vector.shape_cast %122 : vector<32x512xf32> to vector<1x32x512xf32>
      %cst_70 = arith.constant dense<0.000000e+00> : vector<1xf32>
      %124 = vector.multi_reduction <add>, %123, %cst_70 [1, 2] : vector<1x32x512xf32> to vector<1xf32>
      %125 = vector.shape_cast %124 : vector<1xf32> to vector<1x1x1xf32>
      %126 = vector.extract %125[0, 0, 0] : f32 from vector<1x1x1xf32>
      %c1_i32 = arith.constant 1 : i32
      %127 = arith.addi %arg5, %c1_i32 : i32
      %128 = arith.cmpf olt, %126, %3 : f32
      scf.yield %127, %128, %114 : i32, i1, f32
    }
    return
  }
}

</mosaic_0001>

<bundles_post_ra>
// kernel: tpu_custom_call.1
= control target key start
LH: loop header
LB: loop body
LE: loop exit
PB: predicated region body
PF: predicated region fallthrough
CT: control target
= control target key end

     0   :  { %8 = vsyncpa [#allocation4], 0  ;;  %s3010_s0 = inlined_call_operand.hbm [shape: f32[32,32], index: 0, kind: input, shape index: {}]   ;;  %s3011_s1 = inlined_call_operand.hbm [shape: f32[32,512], index: 1, kind: input, shape index: {}]   ;;  %s3012_s2 = inlined_call_operand.vmem [shape: f32[2], index: 2, kind: input, shape index: {}]   ;;  %s3013_s3 = inlined_call_operand.hbm [shape: f32[32,512], index: 3, kind: output, shape index: {}]  }
   0x1   :  { %9 = vsyncpa [#allocation8], 0 }
   0x2   :  { %10 = vsyncpa [#allocation6], 0 }
   0x3   :  { %11 = vsyncpa [#allocation5], 0  ;;  %s2221_s12 = smov [#allocation3]   ;;  %s2119_s16 = scalar_lea.hbm %s3010_s0, 512 }
   0x4   :  { %s17_s13 = sshll.u32 %s2221_s12, 4  ;;  %p2120_p0 = scmp.ne.s32.totalorder %s3010_s0, %s2119_s16  ;;  %s18_s13 = int_to_ptr.vmem [resolvable:$true] %s17_s13 }
   0x5   :  { %p2123_p1 = scmp.lt.u32.totalorder %s2119_s16, %s3010_s0 }
   0x7   :  { %p2125_p2 = pnand %p2123_p1, %p2120_p0 }
   0x9   :  { %2128 = shalt.err (!%p2125_p2)
}
   0xa   :  { %s2129_s21 = scalar_lea.vmem %s18_s13, 512  ;;  %p2134_p4 = scmp.lt.s32.totalorder %s18_s13, %s18_s13 }
   0xb   :  { %p2130_p3 = scmp.ne.s32.totalorder %s18_s13, %s2129_s21  ;;  %p2135_p5 = scmp.lt.s32.totalorder %s2129_s21, %s2129_s21 }
   0xd   :  { %p2136_p6 = por %p2135_p5, %p2134_p4 }
   0xf   :  { %p2137_p7 = pnand %p2136_p6, %p2130_p3 }
  0x11   :  { %2140 = shalt.err (!%p2137_p7)
}
  0x12   :  { %s2222_s22 = smov 128   ;;  %s2223_s23 = smov 8  }
  0x13   :  { %23 = dma.hbm_to_vmem [thread:$0]  %s3010_s0, 512, %s18_s13, [#allocation4], %s2222_s22, %s2222_s22, %s2223_s23  }
  0x14   :  { %s2224_s26 = smov [#allocation7]   ;;  %s2141_s30 = scalar_lea.hbm %s3011_s1, 2048 }
  0x15   :  { %s29_s27 = sshll.u32 %s2224_s26, 4  ;;  %p2142_p8 = scmp.ne.s32.totalorder %s3011_s1, %s2141_s30  ;;  %s30_s27 = int_to_ptr.vmem [resolvable:$true] %s29_s27 }
  0x16   :  { %p2145_p9 = scmp.lt.u32.totalorder %s2141_s30, %s3011_s1 }
  0x18   :  { %p2147_p10 = pnand %p2145_p9, %p2142_p8 }
  0x1a   :  { %2150 = shalt.err (!%p2147_p10)
}
  0x1b   :  { %s2151_s8 = scalar_lea.vmem %s30_s27, 2048  ;;  %p2156_p12 = scmp.lt.s32.totalorder %s30_s27, %s30_s27 }
  0x1c   :  { %p2152_p11 = scmp.ne.s32.totalorder %s30_s27, %s2151_s8  ;;  %p2157_p13 = scmp.lt.s32.totalorder %s2151_s8, %s2151_s8 }
  0x1e   :  { %p2158_p0 = por %p2157_p13, %p2156_p12 }
  0x20   :  { %p2159_p1 = pnand %p2158_p0, %p2152_p11 }
  0x22   :  { %2162 = shalt.err (!%p2159_p1)
}
  0x23   :  { %s2225_s0 = smov 512   ;;  %s2226_s9 = smov 32  }
  0x24   :  { %35 = dma.hbm_to_vmem [thread:$0]  %s3011_s1, 2048, %s30_s27, [#allocation8], %s2225_s0, %s2225_s0, %s2226_s9  }
  0x25   :  { %s42_s14 = sshll.u32 %s3012_s2, 4  ;;  %s43_s14 = int_to_ptr.vmem [resolvable:$true] %s42_s14 }
  0x26   :  { %s2163_s15 = scalar_lea.vmem %s43_s14, 16  ;;  %p2168_p3 = scmp.lt.s32.totalorder %s43_s14, %s43_s14 }
  0x27   :  { %p2164_p2 = scmp.ne.s32.totalorder %s43_s14, %s2163_s15  ;;  %p2169_p4 = scmp.lt.s32.totalorder %s2163_s15, %s2163_s15 }
  0x29   :  { %p2170_p5 = por %p2169_p4, %p2168_p3 }
  0x2b   :  { %p2171_p6 = pnand %p2170_p5, %p2164_p2 }
  0x2d   :  { %2174 = shalt.err (!%p2171_p6)
}
  0x2e   :  { %s2227_s16 = smov [#allocation9]  }
  0x2f   :  { %45 = dma.vmem_to_smem %s43_s14, 16, %s2227_s16, [#allocation6]  }
  0x30   :  { %2205 = dma.done.wait [#allocation4], 512  }
  0x31   :  { %2206 = vsyncadd [#allocation4], 4294966784 }
  0x32   :  { %2207 = dma.done.wait [#allocation8], 2048  }
  0x33   :  { %2208 = vsyncadd [#allocation8], 4294965248 }
  0x34   :  { %2209 = dma.done.wait [#allocation6], 16  }
  0x35   :  { %2210 = vsyncadd [#allocation6], 4294967280 }
  0x36   :  { %55 = sfence }
  0x37   :  { %v2281_v0 = vld [vmem:[#allocation3] sm:$0xff]  ;;  %v2283_v1 = vld [vmem:[#allocation3 + $0x8] sm:$0xff]  ;;  %v2285_v2 = vld [vmem:[#allocation3 + $0x10] sm:$0xff]  ;;  %s2287_s1 = sld [smem:[#allocation9]]  ;;  %s2295_s2 = sld [smem:[#allocation9 + $0x1]]  ;;  %v2228_v6 = vmov 0.0  }
  0x38   :  { %v2289_v3 = vld [vmem:[#allocation3 + $0x18] sm:$0xff]  ;;  %v2291_v4 = vld [vmem:[#allocation7] sm:$0xff]  ;;  %v2293_v5 = vld [vmem:[#allocation7 + $0x8] sm:$0xff]  ;;  %79 = vst [vmem:[#allocation10] sm:$0xff] %v2228_v6  ;;  %s2328_s17 = smov 1.0   ;;  %s2330_s18 = smov 0  }
  0x39   :  { %80 = vst [vmem:[#allocation10 + $0x8] sm:$0xff] %v2228_v6  ;;  %81 = vst [vmem:[#allocation10 + $0x10] sm:$0xff] %v2228_v6  ;;  %v2297_v7 = vld [vmem:[#allocation7 + $0x10] sm:$0xff]  ;;  %v2299_v8 = vld [vmem:[#allocation7 + $0x18] sm:$0xff] }
  0x3a   :  { %82 = vst [vmem:[#allocation10 + $0x18] sm:$0xff] %v2228_v6  ;;  %83 = vst [vmem:[#allocation10 + $0x20] sm:$0xff] %v2228_v6  ;;  %v2301_v9 = vld [vmem:[#allocation7 + $0x20] sm:$0xff]  ;;  %v2303_v10 = vld [vmem:[#allocation7 + $0x28] sm:$0xff] }
  0x3b   :  { %84 = vst [vmem:[#allocation10 + $0x28] sm:$0xff] %v2228_v6  ;;  %85 = vst [vmem:[#allocation10 + $0x30] sm:$0xff] %v2228_v6  ;;  %v2305_v11 = vld [vmem:[#allocation7 + $0x30] sm:$0xff]  ;;  %v2307_v12 = vld [vmem:[#allocation7 + $0x38] sm:$0xff] }
  0x3c   :  { %86 = vst [vmem:[#allocation10 + $0x38] sm:$0xff] %v2228_v6  ;;  %87 = vst [vmem:[#allocation10 + $0x40] sm:$0xff] %v2228_v6  ;;  %v2309_v13 = vld [vmem:[#allocation7 + $0x40] sm:$0xff]  ;;  %v2311_v14 = vld [vmem:[#allocation7 + $0x48] sm:$0xff] }
  0x3d   :  { %88 = vst [vmem:[#allocation10 + $0x48] sm:$0xff] %v2228_v6  ;;  %89 = vst [vmem:[#allocation10 + $0x50] sm:$0xff] %v2228_v6  ;;  %v2313_v15 = vld [vmem:[#allocation7 + $0x50] sm:$0xff]  ;;  %v2315_v16 = vld [vmem:[#allocation7 + $0x58] sm:$0xff]  ;;  %v2326_v21 = vstv %s2287_s1 }
  0x3e   :  { %90 = vst [vmem:[#allocation10 + $0x58] sm:$0xff] %v2228_v6  ;;  %91 = vst [vmem:[#allocation10 + $0x60] sm:$0xff] %v2228_v6  ;;  %v2317_v17 = vld [vmem:[#allocation7 + $0x60] sm:$0xff]  ;;  %v2319_v18 = vld [vmem:[#allocation7 + $0x68] sm:$0xff] }
  0x3f   :  { %92 = vst [vmem:[#allocation10 + $0x68] sm:$0xff] %v2228_v6  ;;  %93 = vst [vmem:[#allocation10 + $0x70] sm:$0xff] %v2228_v6  ;;  %v2321_v19 = vld [vmem:[#allocation7 + $0x70] sm:$0xff]  ;;  %v2323_v20 = vld [vmem:[#allocation7 + $0x78] sm:$0xff] }
  0x40   :  { %94 = vst [vmem:[#allocation10 + $0x78] sm:$0xff] %v2228_v6  ;;  %95 = vst [vmem:[#allocation2] sm:$0xff] %v2228_v6 }
  0x41   :  { %96 = vst [vmem:[#allocation2 + $0x8] sm:$0xff] %v2228_v6  ;;  %97 = vst [vmem:[#allocation2 + $0x10] sm:$0xff] %v2228_v6 }
  0x42   :  { %98 = vst [vmem:[#allocation2 + $0x18] sm:$0xff] %v2228_v6  ;;  %99 = vst [vmem:[#allocation2 + $0x20] sm:$0xff] %v2228_v6 }
  0x43   :  { %100 = vst [vmem:[#allocation2 + $0x28] sm:$0xff] %v2228_v6  ;;  %101 = vst [vmem:[#allocation2 + $0x30] sm:$0xff] %v2228_v6 }
  0x44   :  { %102 = vst [vmem:[#allocation2 + $0x38] sm:$0xff] %v2228_v6  ;;  %103 = vst [vmem:[#allocation2 + $0x40] sm:$0xff] %v2228_v6 }
  0x45   :  { %104 = vst [vmem:[#allocation2 + $0x48] sm:$0xff] %v2228_v6  ;;  %105 = vst [vmem:[#allocation2 + $0x50] sm:$0xff] %v2228_v6 }
  0x46   :  { %106 = vst [vmem:[#allocation2 + $0x58] sm:$0xff] %v2228_v6  ;;  %107 = vst [vmem:[#allocation2 + $0x60] sm:$0xff] %v2228_v6 }
  0x47   :  { %108 = vst [vmem:[#allocation2 + $0x68] sm:$0xff] %v2228_v6  ;;  %109 = vst [vmem:[#allocation2 + $0x70] sm:$0xff] %v2228_v6 }
  0x48   :  { %110 = vst [vmem:[#allocation2 + $0x78] sm:$0xff] %v2228_v6  ;;  %3035 = vst [vmem:[#allocation15_spill] sm:$0xff] %v2307_v12 }
  0x49   :  { %3036 = vst [vmem:[#allocation16_spill] sm:$0xff] %v2309_v13  ;;  %3037 = vst [vmem:[#allocation17_spill] sm:$0xff] %v2311_v14 }
  0x4a   :  { %3038 = vst [vmem:[#allocation18_spill] sm:$0xff] %v2313_v15  ;;  %3039 = vst [vmem:[#allocation19_spill] sm:$0xff] %v2315_v16 }
  0x4b   :  { %3040 = vst [vmem:[#allocation20_spill] sm:$0xff] %v2317_v17  ;;  %3041 = vst [vmem:[#allocation21_spill] sm:$0xff] %v2319_v18 }
  0x4c   :  { %3042 = vst [vmem:[#allocation22_spill] sm:$0xff] %v2321_v19  ;;  %3043 = vst [vmem:[#allocation23_spill] sm:$0xff] %v2323_v20 }
  0x4d LB: > { %v138_v22 = vld [vmem:[#allocation2 + $0x8] sm:$0xff]  ;;  %v140_v24 = vld [vmem:[#allocation2 + $0x18] sm:$0xff]  ;;  %v137_v27 = vld [vmem:[#allocation2] sm:$0xff]  ;;  %v3014_v29 = vmov 0.0   ;;  %s488_s19 = smul.f32 4.0, %s2215_s17  ;;  %vm153_vm0 = vcmask 261120   ;;  %s2215_s17 = sphi %s2328_s17, %s2563_s17   ;;  %s2219_s18 = sphi %s2330_s18, %s1926_s18  }
  0x4e   : > { %v142_v23 = vld [vmem:[#allocation2 + $0x28] sm:$0xff]  ;;  %v144_v26 = vld [vmem:[#allocation2 + $0x38] sm:$0xff]  ;;  %v141_v28 = vld [vmem:[#allocation2 + $0x20] sm:$0xff]  ;;  %230 = vmatprep.mubr.f32.mxu0 %v3014_v29  ;;  %319 = vmatprep.mubr.f32.mxu1 %v3014_v29  ;;  %s1967_s28 = sadd.f32 -1.0, %s2215_s17  ;;  %s1926_s18 = sadd.s32 1, %s2219_s18  }
  0x4f   : > { %v3048_v12 = vld [vmem:[#allocation15_spill] sm:$0xff]  ;;  %v1995_v25 = vpack.c.bf16 %v142_v23, %v138_v22  ;;  %v2003_v30 = vpack.c.bf16 %v144_v26, %v140_v24  ;;  %v1997_v31 = vpack.c.bf16 %v141_v28, %v137_v27  ;;  %v139_v32 = vld [vmem:[#allocation2 + $0x10] sm:$0xff]  ;;  %v146_v34 = vld [vmem:[#allocation2 + $0x48] sm:$0xff]  ;;  %s489_s20 = smul.f32 %s2215_s17, %s488_s19  ;;  %p115_p8 = scmp.lt.s32.totalorder %s1926_s18, 25 }
  0x50   : > { %v3045_v13 = vld [vmem:[#allocation16_spill] sm:$0xff]  ;;  %v3047_v14 = vld [vmem:[#allocation17_spill] sm:$0xff]  ;;  %v148_v37 = vld [vmem:[#allocation2 + $0x58] sm:$0xff] }
  0x51   : > { %v3044_v16 = vld [vmem:[#allocation19_spill] sm:$0xff]  ;;  %v3046_v15 = vld [vmem:[#allocation18_spill] sm:$0xff]  ;;  %v143_v33 = vld [vmem:[#allocation2 + $0x30] sm:$0xff]  ;;  %1996 = vmatprep.subr.bf16.mxu0 %v1995_v25  ;;  %2004 = vmatprep.subr.bf16.mxu1 %v2003_v30  ;;  %s490_s21 = sadd.f32 1.0, %s489_s20 }
  0x52   : > { %v2005_v35 = vpack.c.bf16 %v143_v33, %v139_v32  ;;  %v150_v36 = vld [vmem:[#allocation2 + $0x68] sm:$0xff]  ;;  %v152_v38 = vld [vmem:[#allocation2 + $0x78] sm:$0xff]  ;;  %1998 = vmatpush1.bf16.msra.mxu0 %v1997_v31  ;;  %v145_v41 = vld [vmem:[#allocation2 + $0x40] sm:$0xff] }
  0x53   : > { %v1999_v39 = vpack.c.bf16 %v150_v36, %v146_v34  ;;  %v2007_v40 = vpack.c.bf16 %v152_v38, %v148_v37  ;;  %v149_v42 = vld [vmem:[#allocation2 + $0x60] sm:$0xff]  ;;  %v147_v43 = vld [vmem:[#allocation2 + $0x50] sm:$0xff]  ;;  %v491_v47 = vstv %s490_s21  ;;  %v3049_v17 = vld [vmem:[#allocation20_spill] sm:$0xff] }
  0x54   : > { %2006 = vmatpush1.bf16.msra.mxu1 %v2005_v35  ;;  %v2001_v44 = vpack.c.bf16 %v149_v42, %v145_v41  ;;  %v151_v45 = vld [vmem:[#allocation2 + $0x70] sm:$0xff]  ;;  %2103 = vrsqrt.f32 %v491_v47  ;;  %vm494_vm1 = vcmp.eq.f32.partialorder %v491_v47, inf  ;;  %v497_v49 = vand.u32 2147483648, %v491_v47  ;;  %v3050_v19 = vld [vmem:[#allocation22_spill] sm:$0xff]  ;;  %v3052_v20 = vld [vmem:[#allocation23_spill] sm:$0xff] }
  0x55   : > { %2000 = vmatprep.subr.bf16.mxu0 %v1999_v39  ;;  %2008 = vmatprep.subr.bf16.mxu1 %v2007_v40  ;;  %v2009_v46 = vpack.c.bf16 %v151_v45, %v147_v43  ;;  %vm496_vm2 = vcmp.eq.f32.partialorder %v491_v47, 0.0  ;;  %v3051_v18 = vld [vmem:[#allocation21_spill] sm:$0xff] }
  0x56   : > { %2002 = vmatpush1.bf16.msra.mxu0 %v2001_v44 }
  0x58   : > { %2010 = vmatpush1.bf16.msra.mxu1 %v2009_v46 }
  0x59   : > { %1959 = vmatmul.mubr.msk.f32.vlgmr.msra.gmra.mrb[0].mxu0 %vm153_vm0, %v2281_v0 }
  0x5a   : > { %236 = vmatprep.mubr.f32.mxu0 %v3014_v29 }
  0x5b   : > { %1963 = vmatmul.mubr.msk.f32.vlgmr.msra.gmra.mrb[0].mxu1 %vm153_vm0, %v2281_v0 }
  0x5c   : > { %325 = vmatprep.mubr.f32.mxu1 %v3014_v29 }
  0x5d   : > { %1960 = vmatmul.mubr.msk.f32.gmra.mrb[2].mxu0 %vm153_vm0, %v2283_v1 }
  0x5e   : > { %242 = vmatprep.mubr.f32.mxu0 %v3014_v29  ;;  %v2104_v48 = vpop.eup %2103 }
  0x5f   : > { %1964 = vmatmul.mubr.msk.f32.gmra.mrb[2].mxu1 %vm153_vm0, %v2283_v1  ;;  %v493_v50 = vmul.f32 %v2104_v48, %v491_v47 }
  0x60   : > { %331 = vmatprep.mubr.f32.mxu1 %v3014_v29 }
  0x61   : > { %1961 = vmatmul.mubr.msk.f32.gmra.mrb[4].mxu0 %vm153_vm0, %v2285_v2  ;;  %v495_v51 = vsel %vm494_vm1, %v491_v47, %v493_v50 }
  0x62   : > { %248 = vmatprep.mubr.f32.mxu0 %v3014_v29  ;;  %v498_v52 = vsel %vm496_vm2, %v497_v49, %v495_v51 }
  0x63   : > { %1965 = vmatmul.mubr.msk.f32.gmra.mrb[4].mxu1 %vm153_vm0, %v2285_v2  ;;  %2059 = vpush %v498_v52 }
  0x64   : > { %337 = vmatprep.mubr.f32.mxu1 %v3014_v29 }
  0x65   : > { %1962 = vmatmul.mubr.msk.f32.gmra.mrb[6].mxu0 %vm153_vm0, %v2289_v3 }
  0x66   : > { %668 = vmatprep.mubr.f32.mxu0 %v3014_v29 }
  0x67   : > { %1966 = vmatmul.mubr.msk.f32.gmra.mrb[6].mxu1 %vm153_vm0, %v2289_v3 }
  0x68   : > { %757 = vmatprep.mubr.f32.mxu1 %v3014_v29 }
  0x94   : > { %s2060_s22 = spop %2059 }
  0x95   : > { %s500_s23 = sadd.f32 1.0, %s2060_s22 }
  0x97   : > { %s2366_s24 = smul.f32 0.5, %s500_s23 }
  0x99   : > { %v503_v53 = vstv %s2366_s24  ;;  %s926_s25 = smul.f32 4.0, %s2366_s24  ;;  %s1976_s11 = sadd.f32 -1.0, %s2366_s24 }
  0x9a   : > { %2105 = vrcp.f32 %v503_v53 }
  0x9b   : > { %s927_s26 = smul.f32 %s926_s25, %s2366_s24 }
  0x9d   : > { %s928_s27 = sadd.f32 1.0, %s927_s26 }
  0x9f   : > { %v929_v54 = vstv %s928_s27 }
  0xa0   : > { %2107 = vrsqrt.f32 %v929_v54  ;;  %vm932_vm3 = vcmp.eq.f32.partialorder %v929_v54, inf  ;;  %v935_v57 = vand.u32 2147483648, %v929_v54  ;;  %vm934_vm4 = vcmp.eq.f32.partialorder %v929_v54, 0.0 }
  0xa4   : > { %v2106_v55 = vpop.eup %2105 }
  0xa5   : > { %2061 = vpush %v2106_v55 }
  0xaa   : > { %v2108_v56 = vpop.eup %2107 }
  0xab   : > { %v931_v58 = vmul.f32 %v2108_v56, %v929_v54 }
  0xad   : > { %v933_v59 = vsel %vm932_vm3, %v929_v54, %v931_v58 }
  0xae   : > { %v936_v60 = vsel %vm934_vm4, %v935_v57, %v933_v59 }
  0xaf   : > { %2063 = vpush %v936_v60 }
  0xd6   : > { %s2062_s29 = spop %2061 }
  0xd7   : > { %s2372_s30 = smul.f32 %s2062_s29, %s1967_s28 }
  0xe0   : > { %s2064_s4 = spop %2063 }
  0xe1   : > { %s938_s5 = sadd.f32 1.0, %s2064_s4 }
  0xe3   : > { %s2374_s6 = smul.f32 0.5, %s938_s5 }
  0xe5   : > { %v941_v61 = vstv %s2374_s6  ;;  %s1364_s7 = smul.f32 4.0, %s2374_s6  ;;  %s1985_s20 = sadd.f32 -1.0, %s2374_s6 }
  0xe6   : > { %2109 = vrcp.f32 %v941_v61 }
  0xe7   : > { %s1365_s8 = smul.f32 %s1364_s7, %s2374_s6 }
  0xe9   : > { %s1366_s10 = sadd.f32 1.0, %s1365_s8 }
  0xeb   : > { %v1367_v62 = vstv %s1366_s10 }
  0xec   : > { %2111 = vrsqrt.f32 %v1367_v62  ;;  %vm1370_vm5 = vcmp.eq.f32.partialorder %v1367_v62, inf  ;;  %v1373_v22 = vand.u32 2147483648, %v1367_v62  ;;  %vm1372_vm6 = vcmp.eq.f32.partialorder %v1367_v62, 0.0 }
  0xf0   : > { %v2110_v63 = vpop.eup %2109 }
  0xf1   : > { %2065 = vpush %v2110_v63 }
  0xf6   : > { %v2112_v6 = vpop.eup %2111 }
  0xf7   : > { %v1369_v23 = vmul.f32 %v2112_v6, %v1367_v62 }
  0xf9   : > { %v1371_v24 = vsel %vm1370_vm5, %v1367_v62, %v1369_v23  ;;  %v121_v62 = vld [vmem:[#allocation10] sm:$0xff] }
  0xfa   : > { %v1374_v25 = vsel %vm1372_vm6, %v1373_v22, %v1371_v24 }
  0xfb   : > { %2067 = vpush %v1374_v25  ;;  %v2401_v25 = vstv %s2372_s30 }
 0x122   : > { %s2066_s12 = spop %2065 }
 0x123   : > { %s2380_s13 = smul.f32 %s2066_s12, %s1976_s11 }
 0x12c   : > { %v232_v26 = vpop.f32.mrb[0].mxu0  ;;  %s2068_s14 = spop %2067 }
 0x12d   : > { %v233_v27 = vadd.f32 %v232_v26, %v2291_v4  ;;  %v234_v30 = vpop.f32.mrb[1].mxu0  ;;  %s1376_s15 = sadd.f32 1.0, %s2068_s14 }
 0x12e   : > { %v321_v28 = vpop.f32.mrb[0].mxu1  ;;  %v235_v32 = vadd.f32 %v234_v30, %v2293_v5 }
 0x12f   : > { %v322_v31 = vadd.f32 %v321_v28, %v2297_v7  ;;  %v323_v33 = vpop.f32.mrb[1].mxu1  ;;  %v344_v34 = vand.u32 2147483647, %v233_v27  ;;  %v408_v49 = vand.u32 2147483648, %v233_v27  ;;  %s2392_s16 = smul.f32 0.5, %s1376_s15 }
 0x130   : > { %v324_v35 = vadd.f32 %v323_v33, %v2299_v8  ;;  %v345_v37 = vand.u32 2147483647, %v235_v32  ;;  %v238_v40 = vpop.f32.mrb[2].mxu0  ;;  %v409_v23 = vand.u32 2147483648, %v235_v32  ;;  %v123_v33 = vld [vmem:[#allocation10 + $0x10] sm:$0xff] }
 0x131   : > { %v346_v36 = vand.u32 2147483647, %v322_v31  ;;  %v360_v38 = vsub.f32 %v344_v34, %v2326_v21  ;;  %v239_v44 = vadd.f32 %v238_v40, %v2301_v9  ;;  %v240_v46 = vpop.f32.mrb[3].mxu0  ;;  %v410_v52 = vand.u32 2147483648, %v322_v31  ;;  %s1802_s1 = smul.f32 4.0, %s2392_s16  ;;  %s1994_s26 = sadd.f32 -1.0, %s2392_s16 }
 0x132   : > { %v347_v39 = vand.u32 2147483647, %v324_v35  ;;  %v327_v41 = vpop.f32.mrb[2].mxu1  ;;  %v361_v43 = vsub.f32 %v345_v37, %v2326_v21  ;;  %v241_v54 = vadd.f32 %v240_v46, %v2303_v10  ;;  %v1379_v58 = vstv %s2392_s16  ;;  %v124_v46 = vld [vmem:[#allocation10 + $0x18] sm:$0xff] }
 0x133   : > { %v362_v42 = vsub.f32 %v346_v36, %v2326_v21  ;;  %v328_v45 = vadd.f32 %v327_v41, %v2305_v11  ;;  %v329_v47 = vpop.f32.mrb[3].mxu1  ;;  %v376_v48 = vmax.f32 %v360_v38, 0.0  ;;  %v348_v53 = vand.u32 2147483647, %v239_v44  ;;  %s2419_s17 = smul.f32 %s1802_s1, %s2392_s16 }
 0x134   : > { %v363_v50 = vsub.f32 %v347_v39, %v2326_v21  ;;  %v244_v55 = vpop.f32.mrb[4].mxu0  ;;  %v377_v57 = vmax.f32 %v361_v43, 0.0  ;;  %2113 = vrcp.f32 %v1379_v58  ;;  %v411_v27 = vand.u32 2147483648, %v324_v35  ;;  %v122_v39 = vld [vmem:[#allocation10 + $0x8] sm:$0xff] }
 0x135   : > { %v378_v51 = vmax.f32 %v362_v42, 0.0  ;;  %v2395_v56 = vor.u32 %v408_v49, %v376_v48  ;;  %v350_v59 = vand.u32 2147483647, %v328_v45  ;;  %v246_v61 = vpop.f32.mrb[5].mxu0  ;;  %v364_v6 = vsub.f32 %v348_v53, %v2326_v21  ;;  %s1804_s19 = sadd.f32 1.0, %s2419_s17 }
 0x136   : > { %v333_v60 = vpop.f32.mrb[4].mxu1  ;;  %v379_v63 = vmax.f32 %v363_v50, 0.0  ;;  %v349_v28 = vand.u32 2147483647, %v241_v54  ;;  %v2407_v34 = vor.u32 %v409_v23, %v377_v57  ;;  %v330_v37 = vadd.f32 %v329_v47, %v3048_v12  ;;  %v125_v57 = vld [vmem:[#allocation10 + $0x20] sm:$0xff] }
 0x137   : > { %v335_v22 = vpop.f32.mrb[5].mxu1  ;;  %v366_v24 = vsub.f32 %v350_v59, %v2326_v21  ;;  %v2403_v26 = vor.u32 %v410_v52, %v378_v51  ;;  %v472_v31 = vsub.f32 %v2395_v56, %v121_v62  ;;  %v380_v36 = vmax.f32 %v364_v6, 0.0  ;;  %v127_v62 = vld [vmem:[#allocation10 + $0x30] sm:$0xff] }
 0x138   : > { %v250_v30 = vpop.f32.mrb[6].mxu0  ;;  %v2412_v40 = vor.u32 %v411_v27, %v379_v63  ;;  %v414_v35 = vand.u32 2147483648, %v328_v45  ;;  %v365_v42 = vsub.f32 %v349_v28, %v2326_v21  ;;  %v412_v48 = vand.u32 2147483648, %v239_v44 }
 0x139   : > { %v2410_v38 = vpop.f32.mrb[7].mxu0  ;;  %v382_v41 = vmax.f32 %v366_v24, 0.0  ;;  %v474_v49 = vsub.f32 %v2403_v26, %v123_v33  ;;  %v508_v47 = vmul.f32 %v2401_v25, %v472_v31  ;;  %v473_v51 = vsub.f32 %v2407_v34, %v122_v39 }
 0x13a   : > { %v339_v32 = vpop.f32.mrb[6].mxu1  ;;  %v381_v50 = vmax.f32 %v365_v42, 0.0  ;;  %v2423_v52 = vor.u32 %v412_v48, %v380_v36  ;;  %v351_v53 = vand.u32 2147483647, %v330_v37  ;;  %v475_v45 = vsub.f32 %v2412_v40, %v124_v46  ;;  %v126_v36 = vld [vmem:[#allocation10 + $0x28] sm:$0xff]  ;;  %v128_v42 = vld [vmem:[#allocation10 + $0x38] sm:$0xff] }
 0x13b   : > { %v2415_v43 = vpop.f32.mrb[7].mxu1  ;;  %v2426_v58 = vor.u32 %v414_v35, %v382_v41  ;;  %v413_v59 = vand.u32 2147483648, %v241_v54  ;;  %v245_v44 = vadd.f32 %v244_v55, %v3045_v13  ;;  %v2431_v6 = vadd.f32 %v333_v60, %v3046_v15 }
 0x13c   : > { %v367_v63 = vsub.f32 %v351_v53, %v2326_v21  ;;  %v247_v23 = vadd.f32 %v246_v61, %v3047_v14  ;;  %v2435_v24 = vadd.f32 %v335_v22, %v3044_v16  ;;  %v2438_v28 = vmul.f32 %v2401_v25, %v474_v49 }
 0x13d   : > { %v2441_v31 = vor.u32 %v413_v59, %v381_v50  ;;  %v352_v54 = vand.u32 2147483647, %v245_v44  ;;  %v509_v55 = vmul.f32 %v2401_v25, %v473_v51  ;;  %v476_v33 = vsub.f32 %v2423_v52, %v125_v57 }
 0x13e   : > { %v2114_v27 = vpop.eup %2113  ;;  %v383_v60 = vmax.f32 %v367_v63, 0.0  ;;  %v415_v39 = vand.u32 2147483648, %v330_v37  ;;  %v2446_v61 = vadd.f32 %v508_v47, %v2395_v56  ;;  %v511_v22 = vmul.f32 %v2401_v25, %v475_v45 }
 0x13f   : > { %2069 = vpush %v2114_v27  ;;  %v478_v41 = vsub.f32 %v2426_v58, %v127_v62  ;;  %v353_v35 = vand.u32 2147483647, %v247_v23  ;;  %v368_v48 = vsub.f32 %v352_v54, %v2326_v21  ;;  %v354_v49 = vand.u32 2147483647, %v2431_v6 }
 0x140   : > { %v2450_v46 = vor.u32 %v415_v39, %v383_v60  ;;  %v355_v50 = vand.u32 2147483647, %v2435_v24  ;;  %v2455_v51 = vstv %s1804_s19  ;;  %v477_v37 = vsub.f32 %v2441_v31, %v126_v36 }
 0x141   : > { %v369_v47 = vsub.f32 %v353_v35, %v2326_v21  ;;  %v251_v53 = vadd.f32 %v250_v30, %v3049_v17  ;;  %v2461_v45 = vadd.f32 %v509_v55, %v2407_v34  ;;  %v512_v57 = vmul.f32 %v2401_v25, %v476_v33 }
 0x142   : > { %v371_v59 = vsub.f32 %v355_v50, %v2326_v21  ;;  %v340_v62 = vadd.f32 %v339_v32, %v3050_v19  ;;  %v514_v63 = vmul.f32 %v2401_v25, %v478_v41  ;;  %v479_v27 = vsub.f32 %v2450_v46, %v128_v42 }
 0x143   : > { %v416_v54 = vand.u32 2147483648, %v245_v44  ;;  %v356_v60 = vand.u32 2147483647, %v251_v53  ;;  %v384_v36 = vmax.f32 %v368_v48, 0.0  ;;  %v370_v39 = vsub.f32 %v354_v49, %v2326_v21 }
 0x144   : > { %v418_v30 = vand.u32 2147483648, %v2431_v6  ;;  %v358_v35 = vand.u32 2147483647, %v340_v62  ;;  %v513_v55 = vmul.f32 %v2401_v25, %v477_v37  ;;  %v385_v29 = vmax.f32 %v369_v47, 0.0 }
 0x145   : > { %v417_v33 = vand.u32 2147483648, %v247_v23  ;;  %v372_v50 = vsub.f32 %v356_v60, %v2326_v21  ;;  %v387_v17 = vmax.f32 %v371_v59, 0.0  ;;  %v419_v32 = vand.u32 2147483648, %v2435_v24  ;;  %v129_v24 = vld [vmem:[#allocation10 + $0x40] sm:$0xff] }
 0x146   : > { %v374_v41 = vsub.f32 %v358_v35, %v2326_v21  ;;  %v422_v42 = vand.u32 2147483648, %v340_v62  ;;  %v515_v44 = vmul.f32 %v2401_v25, %v479_v27  ;;  %v420_v19 = vand.u32 2147483648, %v251_v53  ;;  %v133_v62 = vld [vmem:[#allocation10 + $0x60] sm:$0xff] }
 0x147   : > { %v388_v48 = vmax.f32 %v372_v50, 0.0  ;;  %v253_v6 = vadd.f32 %v2410_v38, %v3051_v18  ;;  %v2477_v49 = vor.u32 %v416_v54, %v384_v36  ;;  %v386_v37 = vmax.f32 %v370_v39, 0.0  ;;  %v130_v54 = vld [vmem:[#allocation10 + $0x48] sm:$0xff]  ;;  %v132_v50 = vld [vmem:[#allocation10 + $0x58] sm:$0xff] }
 0x148   : > { %v390_v47 = vmax.f32 %v374_v41, 0.0  ;;  %v342_v23 = vadd.f32 %v2415_v43, %v3052_v20  ;;  %v527_v59 = vadd.f32 %v511_v22, %v2412_v40  ;;  %v2482_v60 = vor.u32 %v417_v33, %v385_v29  ;;  %v135_v29 = vld [vmem:[#allocation10 + $0x70] sm:$0xff] }
 0x149   : > { %v2484_v35 = vor.u32 %v420_v19, %v388_v48  ;;  %v357_v27 = vand.u32 2147483647, %v253_v6  ;;  %v528_v53 = vadd.f32 %v512_v57, %v2423_v52  ;;  %v529_v38 = vadd.f32 %v513_v55, %v2441_v31 }
 0x14a   : > { %v2488_v36 = vor.u32 %v419_v32, %v387_v17  ;;  %v2490_v39 = vor.u32 %v422_v42, %v390_v47  ;;  %v530_v43 = vadd.f32 %v514_v63, %v2426_v58  ;;  %v531_v22 = vadd.f32 %v515_v44, %v2450_v46  ;;  %v131_v17 = vld [vmem:[#allocation10 + $0x50] sm:$0xff] }
 0x14b   : > { %v373_v33 = vsub.f32 %v357_v27, %v2326_v21  ;;  %v359_v19 = vand.u32 2147483647, %v342_v23  ;;  %v480_v41 = vsub.f32 %v2477_v49, %v129_v24  ;;  %v2496_v48 = vor.u32 %v418_v30, %v386_v37  ;;  %v134_v30 = vld [vmem:[#allocation10 + $0x68] sm:$0xff] }
 0x14c   : > { %v484_v57 = vsub.f32 %v2484_v35, %v133_v62  ;;  %2115 = vrsqrt.f32 %v2455_v51  ;;  %v481_v55 = vsub.f32 %v2482_v60, %v130_v54  ;;  %v421_v63 = vand.u32 2147483648, %v253_v6 }
 0x14d   : > { %v389_v32 = vmax.f32 %v373_v33, 0.0  ;;  %v375_v42 = vsub.f32 %v359_v19, %v2326_v21  ;;  %v526_v44 = vadd.f32 %v2438_v28, %v2403_v26  ;;  %v483_v47 = vsub.f32 %v2488_v36, %v132_v50  ;;  %v136_v33 = vld [vmem:[#allocation10 + $0x78] sm:$0xff] }
 0x14e   : > { %v486_v24 = vsub.f32 %v2490_v39, %v135_v29  ;;  %v2011_v37 = vpack.c.bf16 %v529_v38, %v2461_v45  ;;  %v423_v20 = vand.u32 2147483648, %v342_v23  ;;  %v2019_v18 = vpack.c.bf16 %v531_v22, %v527_v59 }
 0x14f   : > { %v2507_v62 = vor.u32 %v421_v63, %v389_v32  ;;  %v391_v27 = vmax.f32 %v375_v42, 0.0  ;;  %v482_v54 = vsub.f32 %v2496_v48, %v131_v17  ;;  %v520_v6 = vmul.f32 %v2401_v25, %v484_v57 }
 0x150   : > { %2012 = vmatprep.subr.bf16.mxu0 %v2011_v37  ;;  %v2013_v28 = vpack.c.bf16 %v528_v53, %v2446_v61  ;;  %v2021_v19 = vpack.c.bf16 %v530_v43, %v526_v44  ;;  %v516_v50 = vmul.f32 %v2401_v25, %v480_v41  ;;  %v517_v29 = vmul.f32 %v2401_v25, %v481_v55 }
 0x151   : > { %v485_v45 = vsub.f32 %v2507_v62, %v134_v30  ;;  %v2515_v38 = vor.u32 %v423_v20, %v391_v27  ;;  %2020 = vmatprep.subr.bf16.mxu1 %v2019_v18  ;;  %v519_v23 = vmul.f32 %v2401_v25, %v483_v47  ;;  %v522_v59 = vmul.f32 %v2401_v25, %v486_v24 }
 0x152   : > { %2014 = vmatpush1.bf16.msra.mxu0 %v2013_v28  ;;  %2022 = vmatpush1.bf16.msra.mxu1 %v2021_v19  ;;  %v518_v53 = vmul.f32 %v2401_v25, %v482_v54  ;;  %v536_v43 = vadd.f32 %v520_v6, %v2484_v35  ;;  %v532_v41 = vadd.f32 %v516_v50, %v2477_v49  ;;  %vm1808_vm7 = vcmp.eq.f32.partialorder %v2455_v51, inf }
 0x153   : > { %v521_v22 = vmul.f32 %v2401_v25, %v485_v45  ;;  %v487_v61 = vsub.f32 %v2515_v38, %v136_v33  ;;  %v533_v20 = vadd.f32 %v517_v29, %v2482_v60  ;;  %v535_v55 = vadd.f32 %v519_v23, %v2488_v36 }
 0x154   : > { %v538_v32 = vadd.f32 %v522_v59, %v2490_v39  ;;  %v1811_v63 = vand.u32 2147483648, %v2455_v51  ;;  %vm1810_vm8 = vcmp.eq.f32.partialorder %v2455_v51, 0.0  ;;  %v534_v24 = vadd.f32 %v518_v53, %v2496_v48 }
 0x155   : > { %v537_v18 = vadd.f32 %v521_v22, %v2507_v62  ;;  %v523_v57 = vmul.f32 %v2401_v25, %v487_v61  ;;  %v2017_v30 = vpack.c.bf16 %v536_v43, %v532_v41  ;;  %v3053_v6 = vmov 0.0  }
 0x156   : > { %v2116_v17 = vpop.eup %2115  ;;  %v2025_v54 = vpack.c.bf16 %v538_v32, %v534_v24 }
 0x157   : > { %v539_v42 = vadd.f32 %v523_v57, %v2515_v38  ;;  %v1807_v44 = vmul.f32 %v2116_v17, %v2455_v51  ;;  %v2015_v47 = vpack.c.bf16 %v537_v18, %v533_v20 }
 0x159   : > { %v1809_v25 = vsel %vm1808_vm7, %v2455_v51, %v1807_v44  ;;  %2016 = vmatprep.subr.bf16.mxu0 %v2015_v47  ;;  %v2023_v37 = vpack.c.bf16 %v539_v42, %v535_v55 }
 0x15a   : > { %v1812_v27 = vsel %vm1810_vm8, %v1811_v63, %v1809_v25  ;;  %2018 = vmatpush1.bf16.msra.mxu0 %v2017_v30 }
 0x15b   : > { %2071 = vpush %v1812_v27  ;;  %2024 = vmatprep.subr.bf16.mxu1 %v2023_v37 }
 0x15c   : > { %2026 = vmatpush1.bf16.msra.mxu1 %v2025_v54 }
 0x15d   : > { %1968 = vmatmul.mubr.msk.f32.vlgmr.msra.gmra.mrb[8].mxu0 %vm153_vm0, %v2281_v0 }
 0x15e   : > { %674 = vmatprep.mubr.f32.mxu0 %v3053_v6 }
 0x15f   : > { %1972 = vmatmul.mubr.msk.f32.vlgmr.msra.gmra.mrb[8].mxu1 %vm153_vm0, %v2281_v0 }
 0x160   : > { %763 = vmatprep.mubr.f32.mxu1 %v3053_v6 }
 0x161   : > { %1969 = vmatmul.mubr.msk.f32.gmra.mrb[10].mxu0 %vm153_vm0, %v2283_v1 }
 0x162   : > { %680 = vmatprep.mubr.f32.mxu0 %v3053_v6 }
 0x163   : > { %1973 = vmatmul.mubr.msk.f32.gmra.mrb[10].mxu1 %vm153_vm0, %v2283_v1 }
 0x164   : > { %769 = vmatprep.mubr.f32.mxu1 %v3053_v6 }
 0x165   : > { %1970 = vmatmul.mubr.msk.f32.gmra.mrb[12].mxu0 %vm153_vm0, %v2285_v2 }
 0x166   : > { %686 = vmatprep.mubr.f32.mxu0 %v3053_v6 }
 0x167   : > { %1974 = vmatmul.mubr.msk.f32.gmra.mrb[12].mxu1 %vm153_vm0, %v2285_v2 }
 0x168   : > { %775 = vmatprep.mubr.f32.mxu1 %v3053_v6 }
 0x169   : > { %1971 = vmatmul.mubr.msk.f32.gmra.mrb[14].mxu0 %vm153_vm0, %v2289_v3 }
 0x16a   : > { %1106 = vmatprep.mubr.f32.mxu0 %v3053_v6 }
 0x16b   : > { %1975 = vmatmul.mubr.msk.f32.gmra.mrb[14].mxu1 %vm153_vm0, %v2289_v3 }
 0x16c   : > { %1195 = vmatprep.mubr.f32.mxu1 %v3053_v6 }
 0x170   : > { %s2070_s21 = spop %2069 }
 0x171   : > { %s2561_s22 = smul.f32 %s2070_s21, %s1985_s20 }
 0x18c   : > { %s2072_s23 = spop %2071 }
 0x18d   : > { %s1814_s24 = sadd.f32 1.0, %s2072_s23 }
 0x18f   : > { %s2563_s17 = smul.f32 0.5, %s1814_s24  }
 0x191   : > { %v1817_v51 = vstv %s2563_s17 }
 0x192   : > { %2117 = vrcp.f32 %v1817_v51 }
 0x19c   : > { %v2118_v33 = vpop.eup %2117 }
 0x19d   : > { %2073 = vpush %v2118_v33 }
 0x1ce   : > { %s2074_s25 = spop %2073 }
 0x1cf   : > { %s1820_s27 = smul.f32 %s2074_s25, %s1994_s26 }
 0x230   : > { %v670_v28 = vpop.f32.mrb[8].mxu0 }
 0x231   : > { %v671_v19 = vadd.f32 %v670_v28, %v2291_v4  ;;  %v672_v50 = vpop.f32.mrb[9].mxu0 }
 0x232   : > { %v759_v29 = vpop.f32.mrb[8].mxu1  ;;  %v673_v45 = vadd.f32 %v672_v50, %v2293_v5 }
 0x233   : > { %v782_v23 = vand.u32 2147483647, %v671_v19  ;;  %v760_v59 = vadd.f32 %v759_v29, %v2297_v7  ;;  %v761_v22 = vpop.f32.mrb[9].mxu1  ;;  %v846_v20 = vand.u32 2147483648, %v671_v19 }
 0x234   : > { %v783_v61 = vand.u32 2147483647, %v673_v45  ;;  %v762_v53 = vadd.f32 %v761_v22, %v2299_v8  ;;  %v676_v43 = vpop.f32.mrb[10].mxu0  ;;  %v847_v32 = vand.u32 2147483648, %v673_v45 }
 0x235   : > { %v798_v41 = vsub.f32 %v782_v23, %v2326_v21  ;;  %v784_v18 = vand.u32 2147483647, %v760_v59  ;;  %v677_v57 = vadd.f32 %v676_v43, %v2301_v9  ;;  %v678_v17 = vpop.f32.mrb[11].mxu0  ;;  %v848_v30 = vand.u32 2147483648, %v760_v59 }
 0x236   : > { %v799_v55 = vsub.f32 %v783_v61, %v2326_v21  ;;  %v785_v63 = vand.u32 2147483647, %v762_v53  ;;  %v765_v42 = vpop.f32.mrb[10].mxu1  ;;  %v679_v44 = vadd.f32 %v678_v17, %v2303_v10  ;;  %v849_v61 = vand.u32 2147483648, %v762_v53 }
 0x237   : > { %v814_v47 = vmax.f32 %v798_v41, 0.0  ;;  %v800_v24 = vsub.f32 %v784_v18, %v2326_v21  ;;  %v786_v25 = vand.u32 2147483647, %v677_v57  ;;  %v767_v37 = vpop.f32.mrb[11].mxu1  ;;  %v766_v51 = vadd.f32 %v765_v42, %v2305_v11 }
 0x238   : > { %v815_v27 = vmax.f32 %v799_v55, 0.0  ;;  %v801_v54 = vsub.f32 %v785_v63, %v2326_v21  ;;  %v787_v33 = vand.u32 2147483647, %v679_v44  ;;  %v682_v28 = vpop.f32.mrb[12].mxu0  ;;  %v850_v17 = vand.u32 2147483648, %v677_v57 }
 0x239   : > { %v2577_v19 = vor.u32 %v846_v20, %v814_v47  ;;  %v816_v50 = vmax.f32 %v800_v24, 0.0  ;;  %v802_v29 = vsub.f32 %v786_v25, %v2326_v21  ;;  %v684_v45 = vpop.f32.mrb[13].mxu0  ;;  %v788_v59 = vand.u32 2147483647, %v766_v51 }
 0x23a   : > { %v2580_v23 = vor.u32 %v847_v32, %v815_v27  ;;  %v817_v22 = vmax.f32 %v801_v54, 0.0  ;;  %v771_v43 = vpop.f32.mrb[12].mxu1  ;;  %v803_v55 = vsub.f32 %v787_v33, %v2326_v21  ;;  %v768_v53 = vadd.f32 %v767_v37, %v3048_v12 }
 0x23b   : > { %v2582_v41 = vor.u32 %v848_v30, %v816_v50  ;;  %v818_v18 = vmax.f32 %v802_v29, 0.0  ;;  %v773_v63 = vpop.f32.mrb[13].mxu1  ;;  %v910_v20 = vsub.f32 %v2577_v19, %v2395_v56  ;;  %v804_v32 = vsub.f32 %v788_v59, %v2326_v21 }
 0x23c   : > { %3054 = vst [vmem:[#allocation24_spill] sm:$0xff] %v2580_v23  ;;  %v911_v42 = vsub.f32 %v2580_v23, %v2407_v34  ;;  %v688_v47 = vpop.f32.mrb[14].mxu0  ;;  %v2593_v30 = vor.u32 %v849_v61, %v817_v22  ;;  %v819_v25 = vmax.f32 %v803_v55, 0.0  ;;  %v852_v33 = vand.u32 2147483648, %v766_v51 }
 0x23d   : > { %3055 = vst [vmem:[#allocation25_spill] sm:$0xff] %v2582_v41  ;;  %v912_v24 = vsub.f32 %v2582_v41, %v2403_v26  ;;  %v2595_v57 = vor.u32 %v850_v17, %v818_v18  ;;  %v690_v27 = vpop.f32.mrb[15].mxu0  ;;  %v820_v54 = vmax.f32 %v804_v32, 0.0  ;;  %v851_v56 = vand.u32 2147483648, %v679_v44 }
 0x23e   : > { %v789_v50 = vand.u32 2147483647, %v768_v53  ;;  %v777_v29 = vpop.f32.mrb[14].mxu1  ;;  %v2598_v34 = vstv %s2380_s13  ;;  %v913_v51 = vsub.f32 %v2593_v30, %v2412_v40  ;;  %v853_v55 = vand.u32 2147483648, %v768_v53 }
 0x23f   : > { %v2600_v59 = vpop.f32.mrb[15].mxu1  ;;  %v946_v37 = vmul.f32 %v2598_v34, %v910_v20  ;;  %v2603_v12 = vor.u32 %v851_v56, %v819_v25  ;;  %v948_v22 = vmul.f32 %v2598_v34, %v912_v24  ;;  %v947_v61 = vmul.f32 %v2598_v34, %v911_v42 }
 0x240   : > { %v805_v26 = vsub.f32 %v789_v50, %v2326_v21  ;;  %v914_v44 = vsub.f32 %v2595_v57, %v2423_v52  ;;  %v2612_v18 = vor.u32 %v852_v33, %v820_v54  ;;  %v683_v20 = vadd.f32 %v682_v28, %v3045_v13 }
 0x241   : > { %v2616_v32 = vadd.f32 %v771_v43, %v3046_v15  ;;  %v685_v25 = vadd.f32 %v684_v45, %v3047_v14  ;;  %v2620_v24 = vadd.f32 %v946_v37, %v2577_v19  ;;  %v915_v40 = vsub.f32 %v2603_v12, %v2441_v31 }
 0x242   : > { %v821_v17 = vmax.f32 %v805_v26, 0.0  ;;  %v790_v52 = vand.u32 2147483647, %v683_v20  ;;  %v2627_v54 = vadd.f32 %v947_v61, %v2580_v23  ;;  %v949_v53 = vmul.f32 %v2598_v34, %v913_v51  ;;  %v3056_v61 = vld [vmem:[#allocation20_spill] sm:$0xff] }
 0x243   : > { %v792_v28 = vand.u32 2147483647, %v2616_v32  ;;  %v791_v43 = vand.u32 2147483647, %v685_v25  ;;  %v2632_v33 = vadd.f32 %v948_v22, %v2582_v41  ;;  %v950_v45 = vmul.f32 %v2598_v34, %v914_v44  ;;  %v3058_v44 = vld [vmem:[#allocation21_spill] sm:$0xff] }
 0x244   : > { %v2624_v42 = vor.u32 %v853_v55, %v821_v17  ;;  %v916_v56 = vsub.f32 %v2612_v18, %v2426_v58  ;;  %v806_v31 = vsub.f32 %v790_v52, %v2326_v21  ;;  %v774_v26 = vadd.f32 %v773_v63, %v3044_v16  ;;  %v3057_v55 = vld [vmem:[#allocation22_spill] sm:$0xff] }
 0x245   : > { %v807_v37 = vsub.f32 %v791_v43, %v2326_v21  ;;  %v689_v51 = vadd.f32 %v688_v47, %v3056_v61  ;;  %v951_v17 = vmul.f32 %v2598_v34, %v915_v40  ;;  %v855_v22 = vand.u32 2147483648, %v685_v25 }
 0x246   : > { %v917_v50 = vsub.f32 %v2624_v42, %v2450_v46  ;;  %v778_v14 = vadd.f32 %v777_v29, %v3057_v55  ;;  %v691_v15 = vadd.f32 %v690_v27, %v3058_v44  ;;  %v822_v13 = vmax.f32 %v806_v31, 0.0 }
 0x247   : > { %v808_v58 = vsub.f32 %v792_v28, %v2326_v21  ;;  %v823_v52 = vmax.f32 %v807_v37, 0.0  ;;  %v793_v41 = vand.u32 2147483647, %v774_v26  ;;  %v966_v46 = vadd.f32 %v950_v45, %v2595_v57 }
 0x248   : > { %v952_v43 = vmul.f32 %v2598_v34, %v916_v56  ;;  %v854_v23 = vand.u32 2147483648, %v683_v20  ;;  %v794_v63 = vand.u32 2147483647, %v689_v51  ;;  %v953_v47 = vmul.f32 %v2598_v34, %v917_v50 }
 0x249   : > { %v2650_v61 = vor.u32 %v855_v22, %v823_v52  ;;  %v809_v25 = vsub.f32 %v793_v41, %v2326_v21  ;;  %v796_v29 = vand.u32 2147483647, %v778_v14  ;;  %v967_v27 = vadd.f32 %v951_v17, %v2603_v12 }
 0x24a   : > { %v856_v40 = vand.u32 2147483648, %v2616_v32  ;;  %v810_v28 = vsub.f32 %v794_v63, %v2326_v21  ;;  %v795_v31 = vand.u32 2147483647, %v691_v15  ;;  %v2656_v37 = vor.u32 %v854_v23, %v822_v13 }
 0x24b   : > { %v824_v45 = vmax.f32 %v808_v58, 0.0  ;;  %v812_v20 = vsub.f32 %v796_v29, %v2326_v21  ;;  %v860_v56 = vand.u32 2147483648, %v778_v14  ;;  %v825_v44 = vmax.f32 %v809_v25, 0.0  ;;  %v3059_v58 = vld [vmem:[#allocation23_spill] sm:$0xff] }
 0x24c   : > { %v826_v50 = vmax.f32 %v810_v28, 0.0  ;;  %v858_v22 = vand.u32 2147483648, %v689_v51  ;;  %v811_v52 = vsub.f32 %v795_v31, %v2326_v21  ;;  %v969_v41 = vadd.f32 %v953_v47, %v2624_v42 }
 0x24d   : > { %v919_v17 = vsub.f32 %v2650_v61, %v2482_v60  ;;  %v857_v32 = vand.u32 2147483648, %v774_v26  ;;  %v828_v55 = vmax.f32 %v812_v20, 0.0  ;;  %v859_v23 = vand.u32 2147483648, %v691_v15 }
 0x24e   : > { %v2663_v63 = vor.u32 %v858_v22, %v826_v50  ;;  %v827_v13 = vmax.f32 %v811_v52, 0.0  ;;  %v780_v29 = vadd.f32 %v2600_v59, %v3059_v58  ;;  %v965_v14 = vadd.f32 %v949_v53, %v2593_v30 }
 0x24f   : > { %v968_v51 = vadd.f32 %v952_v43, %v2612_v18  ;;  %v918_v25 = vsub.f32 %v2656_v37, %v2477_v49  ;;  %v2671_v47 = vor.u32 %v860_v56, %v828_v55  ;;  %v2673_v28 = vor.u32 %v857_v32, %v825_v44 }
 0x250   : > { %v922_v60 = vsub.f32 %v2663_v63, %v2484_v35  ;;  %v2677_v26 = vor.u32 %v859_v23, %v827_v13  ;;  %v797_v15 = vand.u32 2147483647, %v780_v29  ;;  %v2679_v31 = vor.u32 %v856_v40, %v824_v45 }
 0x251   : > { %v955_v59 = vmul.f32 %v2598_v34, %v919_v17  ;;  %v2027_v53 = vpack.c.bf16 %v967_v27, %v2627_v54  ;;  %v2035_v43 = vpack.c.bf16 %v969_v41, %v965_v14  ;;  %v2029_v44 = vpack.c.bf16 %v966_v46, %v2620_v24 }
 0x252   : > { %v958_v20 = vmul.f32 %v2598_v34, %v922_v60  ;;  %v923_v49 = vsub.f32 %v2677_v26, %v2507_v62  ;;  %v813_v55 = vsub.f32 %v797_v15, %v2326_v21  ;;  %v954_v35 = vmul.f32 %v2598_v34, %v918_v25 }
 0x253   : > { %v924_v40 = vsub.f32 %v2671_v47, %v2490_v39  ;;  %2028 = vmatprep.subr.bf16.mxu0 %v2027_v53  ;;  %2036 = vmatprep.subr.bf16.mxu1 %v2035_v43  ;;  %v2037_v45 = vpack.c.bf16 %v968_v51, %v2632_v33  ;;  %v921_v54 = vsub.f32 %v2673_v28, %v2488_v36  ;;  %v861_v62 = vand.u32 2147483648, %v780_v29 }
 0x254   : > { %v959_v27 = vmul.f32 %v2598_v34, %v923_v49  ;;  %v829_v56 = vmax.f32 %v813_v55, 0.0  ;;  %2030 = vmatpush1.bf16.msra.mxu0 %v2029_v44  ;;  %v920_v24 = vsub.f32 %v2679_v31, %v2496_v48  ;;  %v974_v46 = vadd.f32 %v958_v20, %v2663_v63 }
 0x255   : > { %2038 = vmatpush1.bf16.msra.mxu1 %v2037_v45  ;;  %v971_v39 = vadd.f32 %v955_v59, %v2650_v61  ;;  %v970_v33 = vadd.f32 %v954_v35, %v2656_v37  ;;  %v960_v36 = vmul.f32 %v2598_v34, %v924_v40  ;;  %v957_v52 = vmul.f32 %v2598_v34, %v921_v54 }
 0x256   : > { %v975_v50 = vadd.f32 %v959_v27, %v2677_v26  ;;  %v2700_v22 = vor.u32 %v861_v62, %v829_v56  ;;  %v956_v48 = vmul.f32 %v2598_v34, %v920_v24 }
 0x257   : > { %v2033_v32 = vpack.c.bf16 %v974_v46, %v970_v33  ;;  %v976_v23 = vadd.f32 %v960_v36, %v2671_v47  ;;  %v973_v29 = vadd.f32 %v957_v52, %v2673_v28 }
 0x258   : > { %v925_v41 = vsub.f32 %v2700_v22, %v2515_v38  ;;  %v2031_v17 = vpack.c.bf16 %v975_v50, %v971_v39  ;;  %v972_v51 = vadd.f32 %v956_v48, %v2679_v31 }
 0x25a   : > { %v961_v13 = vmul.f32 %v2598_v34, %v925_v41  ;;  %2032 = vmatprep.subr.bf16.mxu0 %v2031_v17  ;;  %v2041_v38 = vpack.c.bf16 %v976_v23, %v972_v51 }
 0x25b   : > { %2034 = vmatpush1.bf16.msra.mxu0 %v2033_v32 }
 0x25c   : > { %v977_v14 = vadd.f32 %v961_v13, %v2700_v22 }
 0x25e   : > { %v2039_v25 = vpack.c.bf16 %v977_v14, %v973_v29  ;;  %1977 = vmatmul.mubr.msk.f32.vlgmr.msra.gmra.mrb[16].mxu0 %vm153_vm0, %v2281_v0 }
 0x25f   : > { %1112 = vmatprep.mubr.f32.mxu0 %v3053_v6 }
 0x260   : > { %2040 = vmatprep.subr.bf16.mxu1 %v2039_v25 }
 0x261   : > { %2042 = vmatpush1.bf16.msra.mxu1 %v2041_v38 }
 0x262   : > { %1978 = vmatmul.mubr.msk.f32.gmra.mrb[18].mxu0 %vm153_vm0, %v2283_v1 }
 0x263   : > { %1118 = vmatprep.mubr.f32.mxu0 %v3053_v6 }
 0x264   : > { %1981 = vmatmul.mubr.msk.f32.vlgmr.msra.gmra.mrb[16].mxu1 %vm153_vm0, %v2281_v0 }
 0x265   : > { %1201 = vmatprep.mubr.f32.mxu1 %v3053_v6 }
 0x266   : > { %1979 = vmatmul.mubr.msk.f32.gmra.mrb[20].mxu0 %vm153_vm0, %v2285_v2 }
 0x267   : > { %1124 = vmatprep.mubr.f32.mxu0 %v3053_v6 }
 0x268   : > { %1982 = vmatmul.mubr.msk.f32.gmra.mrb[18].mxu1 %vm153_vm0, %v2283_v1 }
 0x269   : > { %1207 = vmatprep.mubr.f32.mxu1 %v3053_v6 }
 0x26a   : > { %1980 = vmatmul.mubr.msk.f32.gmra.mrb[22].mxu0 %vm153_vm0, %v2289_v3 }
 0x26b   : > { %1544 = vmatprep.mubr.f32.mxu0 %v3053_v6 }
 0x26c   : > { %1983 = vmatmul.mubr.msk.f32.gmra.mrb[20].mxu1 %vm153_vm0, %v2285_v2 }
 0x26d   : > { %1213 = vmatprep.mubr.f32.mxu1 %v3053_v6 }
 0x270   : > { %1984 = vmatmul.mubr.msk.f32.gmra.mrb[22].mxu1 %vm153_vm0, %v2289_v3 }
 0x271   : > { %1633 = vmatprep.mubr.f32.mxu1 %v3053_v6 }
 0x331   : > { %v1108_v34 = vpop.f32.mrb[16].mxu0 }
 0x332   : > { %v1109_v60 = vadd.f32 %v1108_v34, %v2291_v4  ;;  %v1110_v15 = vpop.f32.mrb[17].mxu0 }
 0x333   : > { %v1111_v59 = vadd.f32 %v1110_v15, %v2293_v5 }
 0x334   : > { %v1220_v53 = vand.u32 2147483647, %v1109_v60  ;;  %v1284_v27 = vand.u32 2147483648, %v1109_v60 }
 0x335   : > { %v1221_v43 = vand.u32 2147483647, %v1111_v59  ;;  %v1114_v20 = vpop.f32.mrb[18].mxu0  ;;  %v1285_v41 = vand.u32 2147483648, %v1111_v59 }
 0x336   : > { %v1236_v49 = vsub.f32 %v1220_v53, %v2326_v21  ;;  %v1115_v55 = vadd.f32 %v1114_v20, %v2301_v9  ;;  %v1116_v44 = vpop.f32.mrb[19].mxu0 }
 0x337   : > { %v1197_v35 = vpop.f32.mrb[16].mxu1  ;;  %v1237_v40 = vsub.f32 %v1221_v43, %v2326_v21  ;;  %v1117_v45 = vadd.f32 %v1116_v44, %v2303_v10  ;;  %v3061_v43 = vld [vmem:[#allocation15_spill] sm:$0xff] }
 0x338   : > { %v1252_v54 = vmax.f32 %v1236_v49, 0.0  ;;  %v1198_v56 = vadd.f32 %v1197_v35, %v2297_v7  ;;  %v1199_v62 = vpop.f32.mrb[17].mxu1  ;;  %v1224_v24 = vand.u32 2147483647, %v1115_v55  ;;  %v1288_v23 = vand.u32 2147483648, %v1115_v55 }
 0x339   : > { %v1253_v46 = vmax.f32 %v1237_v40, 0.0  ;;  %v1200_v39 = vadd.f32 %v1199_v62, %v2299_v8  ;;  %v1225_v50 = vand.u32 2147483647, %v1117_v45  ;;  %v1120_v33 = vpop.f32.mrb[20].mxu0  ;;  %v1289_v53 = vand.u32 2147483648, %v1117_v45  ;;  %v3065_v45 = vld [vmem:[#allocation24_spill] sm:$0xff] }
 0x33a   : > { %v2745_v36 = vor.u32 %v1284_v27, %v1252_v54  ;;  %v1222_v52 = vand.u32 2147483647, %v1198_v56  ;;  %v1240_v17 = vsub.f32 %v1224_v24, %v2326_v21  ;;  %v1122_v48 = vpop.f32.mrb[21].mxu0  ;;  %v1286_v32 = vand.u32 2147483648, %v1198_v56 }
 0x33b   : > { %v1223_v13 = vand.u32 2147483647, %v1200_v39  ;;  %v1203_v29 = vpop.f32.mrb[18].mxu1  ;;  %v1241_v14 = vsub.f32 %v1225_v50, %v2326_v21  ;;  %v2750_v25 = vor.u32 %v1285_v41, %v1253_v46  ;;  %v1287_v50 = vand.u32 2147483648, %v1200_v39 }
 0x33c   : > { %v1238_v51 = vsub.f32 %v1222_v52, %v2326_v21  ;;  %v1256_v38 = vmax.f32 %v1240_v17, 0.0  ;;  %v1204_v34 = vadd.f32 %v1203_v29, %v2305_v11  ;;  %v1205_v60 = vpop.f32.mrb[19].mxu1  ;;  %v1348_v55 = vsub.f32 %v2745_v36, %v2577_v19 }
 0x33d   : > { %3060 = vst [vmem:[#allocation26_spill] sm:$0xff] %v2750_v25  ;;  %v1239_v15 = vsub.f32 %v1223_v13, %v2326_v21  ;;  %v1257_v59 = vmax.f32 %v1241_v14, 0.0  ;;  %v1206_v20 = vadd.f32 %v1205_v60, %v3061_v43  ;;  %v1126_v49 = vpop.f32.mrb[22].mxu0  ;;  %v1349_v46 = vsub.f32 %v2750_v25, %v3065_v45 }
 0x33e   : > { %v1254_v44 = vmax.f32 %v1238_v51, 0.0  ;;  %v2757_v35 = vor.u32 %v1288_v23, %v1256_v38  ;;  %v1226_v40 = vand.u32 2147483647, %v1204_v34  ;;  %v2759_v54 = vpop.f32.mrb[23].mxu0  ;;  %v2769_v19 = vstv %s2561_s22  ;;  %v3066_v51 = vld [vmem:[#allocation25_spill] sm:$0xff] }
 0x33f   : > { %v1255_v27 = vmax.f32 %v1239_v15, 0.0  ;;  %v2761_v56 = vor.u32 %v1289_v53, %v1257_v59  ;;  %v1209_v62 = vpop.f32.mrb[20].mxu1  ;;  %v1290_v17 = vand.u32 2147483648, %v1204_v34  ;;  %v1227_v13 = vand.u32 2147483647, %v1206_v20  ;;  %v3067_v15 = vld [vmem:[#allocation16_spill] sm:$0xff] }
 0x340   : > { %3062 = vst [vmem:[#allocation27_spill] sm:$0xff] %v2757_v35  ;;  %v2763_v24 = vor.u32 %v1286_v32, %v1254_v44  ;;  %v1242_v52 = vsub.f32 %v1226_v40, %v2326_v21  ;;  %v1211_v41 = vpop.f32.mrb[21].mxu1  ;;  %v1384_v23 = vmul.f32 %v2769_v19, %v1348_v55  ;;  %v1352_v14 = vsub.f32 %v2757_v35, %v2595_v57  ;;  %v3068_v55 = vld [vmem:[#allocation18_spill] sm:$0xff] }
 0x341   : > { %3063 = vst [vmem:[#allocation28_spill] sm:$0xff] %v2761_v56  ;;  %v2772_v29 = vor.u32 %v1287_v50, %v1255_v27  ;;  %v1353_v39 = vsub.f32 %v2761_v56, %v2603_v12  ;;  %v1243_v60 = vsub.f32 %v1227_v13, %v2326_v21  ;;  %v1121_v59 = vadd.f32 %v1120_v33, %v3067_v15  ;;  %v3071_v15 = vld [vmem:[#allocation22_spill] sm:$0xff] }
 0x342   : > { %3064 = vst [vmem:[#allocation29_spill] sm:$0xff] %v2763_v24  ;;  %v1258_v32 = vmax.f32 %v1242_v52, 0.0  ;;  %v1350_v38 = vsub.f32 %v2763_v24, %v3066_v51  ;;  %v1385_v53 = vmul.f32 %v2769_v19, %v1349_v46  ;;  %v1210_v44 = vadd.f32 %v1209_v62, %v3068_v55 }
 0x343   : > { %v1215_v34 = vpop.f32.mrb[22].mxu1  ;;  %v1259_v57 = vmax.f32 %v1243_v60, 0.0  ;;  %v1291_v45 = vand.u32 2147483648, %v1206_v20  ;;  %v1228_v50 = vand.u32 2147483647, %v1121_v59  ;;  %v1351_v52 = vsub.f32 %v2772_v29, %v2593_v30 }
 0x344   : > { %v1217_v40 = vpop.f32.mrb[23].mxu1  ;;  %v2784_v27 = vor.u32 %v1290_v17, %v1258_v32  ;;  %v1388_v12 = vmul.f32 %v2769_v19, %v1352_v14  ;;  %v2790_v13 = vadd.f32 %v1384_v23, %v2745_v36  ;;  %v1386_v33 = vmul.f32 %v2769_v19, %v1350_v38  ;;  %v3069_v32 = vld [vmem:[#allocation17_spill] sm:$0xff]  ;;  %v3070_v23 = vld [vmem:[#allocation20_spill] sm:$0xff] }
 0x345   : > { %v1389_v46 = vmul.f32 %v2769_v19, %v1353_v39  ;;  %v2794_v51 = vor.u32 %v1291_v45, %v1259_v57  ;;  %v1401_v62 = vadd.f32 %v1385_v53, %v2750_v25  ;;  %v1230_v17 = vand.u32 2147483647, %v1210_v44 }
 0x346   : > { %v1123_v20 = vadd.f32 %v1122_v48, %v3069_v32  ;;  %v1212_v60 = vadd.f32 %v1211_v41, %v3044_v16  ;;  %v1354_v30 = vsub.f32 %v2784_v27, %v2612_v18  ;;  %v1244_v14 = vsub.f32 %v1228_v50, %v2326_v21 }
 0x347   : > { %v1127_v55 = vadd.f32 %v1126_v49, %v3070_v23  ;;  %v1216_v38 = vadd.f32 %v1215_v34, %v3071_v15  ;;  %v1387_v39 = vmul.f32 %v2769_v19, %v1351_v52  ;;  %v1404_v57 = vadd.f32 %v1388_v12, %v2757_v35 }
 0x348   : > { %v1355_v53 = vsub.f32 %v2794_v51, %v2624_v42  ;;  %v1229_v45 = vand.u32 2147483647, %v1123_v20  ;;  %v2809_v48 = vadd.f32 %v1386_v33, %v2763_v24  ;;  %v1405_v41 = vadd.f32 %v1389_v46, %v2761_v56 }
 0x349   : > { %v1292_v18 = vand.u32 2147483648, %v1121_v59  ;;  %v1231_v16 = vand.u32 2147483647, %v1212_v60  ;;  %v1246_v50 = vsub.f32 %v1230_v17, %v2326_v21  ;;  %v1294_v49 = vand.u32 2147483648, %v1210_v44  ;;  %v3072_v44 = vld [vmem:[#allocation21_spill] sm:$0xff] }
 0x34a   : > { %v1245_v34 = vsub.f32 %v1229_v45, %v2326_v21  ;;  %v1232_v15 = vand.u32 2147483647, %v1127_v55  ;;  %v1390_v52 = vmul.f32 %v2769_v19, %v1354_v30  ;;  %v1260_v12 = vmax.f32 %v1244_v14, 0.0 }
 0x34b   : > { %v1247_v23 = vsub.f32 %v1231_v16, %v2326_v21  ;;  %v1234_v42 = vand.u32 2147483647, %v1216_v38  ;;  %v1391_v32 = vmul.f32 %v2769_v19, %v1355_v53  ;;  %v1293_v35 = vand.u32 2147483648, %v1123_v20 }
 0x34c   : > { %v1261_v33 = vmax.f32 %v1245_v34, 0.0  ;;  %v1248_v46 = vsub.f32 %v1232_v15, %v2326_v21  ;;  %v1298_v17 = vand.u32 2147483648, %v1216_v38  ;;  %v1129_v45 = vadd.f32 %v2759_v54, %v3072_v44 }
 0x34d   : > { %v1263_v59 = vmax.f32 %v1247_v23, 0.0  ;;  %v1250_v56 = vsub.f32 %v1234_v42, %v2326_v21  ;;  %v1262_v24 = vmax.f32 %v1246_v50, 0.0  ;;  %v1296_v30 = vand.u32 2147483648, %v1127_v55 }
 0x34e   : > { %v1264_v43 = vmax.f32 %v1248_v46, 0.0  ;;  %v1218_v14 = vadd.f32 %v1217_v40, %v3059_v58  ;;  %v2822_v16 = vor.u32 %v1293_v35, %v1261_v33  ;;  %v1295_v25 = vand.u32 2147483648, %v1212_v60 }
 0x34f   : > { %v1266_v53 = vmax.f32 %v1250_v56, 0.0  ;;  %v1233_v34 = vand.u32 2147483647, %v1129_v45  ;;  %v1403_v20 = vadd.f32 %v1387_v39, %v2772_v29  ;;  %v1407_v15 = vadd.f32 %v1391_v32, %v2794_v51 }
 0x350   : > { %v2826_v23 = vor.u32 %v1292_v18, %v1260_v12  ;;  %v2828_v38 = vor.u32 %v1296_v30, %v1264_v43  ;;  %v2830_v42 = vor.u32 %v1295_v25, %v1263_v59  ;;  %v1235_v40 = vand.u32 2147483647, %v1218_v14 }
 0x351   : > { %v2832_v54 = vor.u32 %v1298_v17, %v1266_v53  ;;  %v1249_v55 = vsub.f32 %v1233_v34, %v2326_v21  ;;  %v1406_v35 = vadd.f32 %v1390_v52, %v2784_v27  ;;  %v2836_v60 = vor.u32 %v1294_v49, %v1262_v24 }
 0x352   : > { %v1360_v56 = vsub.f32 %v2828_v38, %v2663_v63  ;;  %v2043_v39 = vpack.c.bf16 %v1405_v41, %v1401_v62  ;;  %v1357_v32 = vsub.f32 %v2822_v16, %v2650_v61  ;;  %v1297_v18 = vand.u32 2147483648, %v1129_v45 }
 0x353   : > { %v1265_v43 = vmax.f32 %v1249_v55, 0.0  ;;  %v1251_v25 = vsub.f32 %v1235_v40, %v2326_v21  ;;  %v1356_v50 = vsub.f32 %v2826_v23, %v2656_v37  ;;  %v1362_v12 = vsub.f32 %v2832_v54, %v2671_v47 }
 0x354   : > { %2044 = vmatprep.subr.bf16.mxu0 %v2043_v39  ;;  %v2051_v24 = vpack.c.bf16 %v1407_v15, %v1403_v20  ;;  %v2045_v49 = vpack.c.bf16 %v1404_v57, %v2790_v13  ;;  %v1359_v63 = vsub.f32 %v2830_v42, %v2673_v28  ;;  %v1299_v41 = vand.u32 2147483648, %v1218_v14 }
 0x355   : > { %v2850_v62 = vor.u32 %v1297_v18, %v1265_v43  ;;  %v1267_v61 = vmax.f32 %v1251_v25, 0.0  ;;  %v1358_v52 = vsub.f32 %v2836_v60, %v2679_v31  ;;  %v1396_v33 = vmul.f32 %v2769_v19, %v1360_v56 }
 0x356   : > { %2052 = vmatprep.subr.bf16.mxu1 %v2051_v24  ;;  %2046 = vmatpush1.bf16.msra.mxu0 %v2045_v49  ;;  %v2053_v37 = vpack.c.bf16 %v1406_v35, %v2809_v48  ;;  %v1393_v47 = vmul.f32 %v2769_v19, %v1357_v32  ;;  %v1392_v28 = vmul.f32 %v2769_v19, %v1356_v50  ;;  %v2902_v25 = vstv %s1820_s27 }
 0x357   : > { %v1361_v13 = vsub.f32 %v2850_v62, %v2677_v26  ;;  %v2859_v57 = vor.u32 %v1299_v41, %v1267_v61  ;;  %v1398_v46 = vmul.f32 %v2769_v19, %v1362_v12  ;;  %v1395_v31 = vmul.f32 %v2769_v19, %v1359_v63 }
 0x358   : > { %2054 = vmatpush1.bf16.msra.mxu1 %v2053_v37  ;;  %v1394_v48 = vmul.f32 %v2769_v19, %v1358_v52  ;;  %v1412_v45 = vadd.f32 %v1396_v33, %v2828_v38  ;;  %v1409_v26 = vadd.f32 %v1393_v47, %v2822_v16  ;;  %v1408_v53 = vadd.f32 %v1392_v28, %v2826_v23 }
 0x359   : > { %v1397_v59 = vmul.f32 %v2769_v19, %v1361_v13  ;;  %v1363_v17 = vsub.f32 %v2859_v57, %v2700_v22  ;;  %v1414_v34 = vadd.f32 %v1398_v46, %v2832_v54  ;;  %v1411_v20 = vadd.f32 %v1395_v31, %v2830_v42 }
 0x35a   : > { %v1410_v22 = vadd.f32 %v1394_v48, %v2836_v60  ;;  %v2049_v40 = vpack.c.bf16 %v1412_v45, %v1408_v53 }
 0x35b   : > { %v1413_v30 = vadd.f32 %v1397_v59, %v2850_v62  ;;  %v1399_v14 = vmul.f32 %v2769_v19, %v1363_v17 }
 0x35c   : > { %v2057_v56 = vpack.c.bf16 %v1414_v34, %v1410_v22 }
 0x35d   : > { %v1415_v15 = vadd.f32 %v1399_v14, %v2859_v57  ;;  %v2047_v55 = vpack.c.bf16 %v1413_v30, %v1409_v26 }
 0x35f   : > { %2048 = vmatprep.subr.bf16.mxu0 %v2047_v55  ;;  %v2055_v35 = vpack.c.bf16 %v1415_v15, %v1411_v20 }
 0x360   : > { %2050 = vmatpush1.bf16.msra.mxu0 %v2049_v40 }
 0x361   : > { %2056 = vmatprep.subr.bf16.mxu1 %v2055_v35 }
 0x362   : > { %2058 = vmatpush1.bf16.msra.mxu1 %v2057_v56 }
 0x363   : > { %1986 = vmatmul.mubr.msk.f32.vlgmr.msra.gmra.mrb[24].mxu0 %vm153_vm0, %v2281_v0 }
 0x364   : > { %1550 = vmatprep.mubr.f32.mxu0 %v3053_v6 }
 0x365   : > { %1990 = vmatmul.mubr.msk.f32.vlgmr.msra.gmra.mrb[24].mxu1 %vm153_vm0, %v2281_v0 }
 0x366   : > { %1639 = vmatprep.mubr.f32.mxu1 %v3053_v6 }
 0x367   : > { %1987 = vmatmul.mubr.msk.f32.gmra.mrb[26].mxu0 %vm153_vm0, %v2283_v1 }
 0x368   : > { %1556 = vmatprep.mubr.f32.mxu0 %v3053_v6 }
 0x369   : > { %1991 = vmatmul.mubr.msk.f32.gmra.mrb[26].mxu1 %vm153_vm0, %v2283_v1 }
 0x36a   : > { %1645 = vmatprep.mubr.f32.mxu1 %v3053_v6 }
 0x36b   : > { %1988 = vmatmul.mubr.msk.f32.gmra.mrb[28].mxu0 %vm153_vm0, %v2285_v2 }
 0x36c   : > { %1562 = vmatprep.mubr.f32.mxu0 %v3053_v6 }
 0x36d   : > { %1992 = vmatmul.mubr.msk.f32.gmra.mrb[28].mxu1 %vm153_vm0, %v2285_v2 }
 0x36e   : > { %1651 = vmatprep.mubr.f32.mxu1 %v3053_v6 }
 0x36f   : > { %1989 = vmatmul.mubr.msk.f32.gmra.mrb[30].mxu0 %vm153_vm0, %v2289_v3 }
 0x371   : > { %1993 = vmatmul.mubr.msk.f32.gmra.mrb[30].mxu1 %vm153_vm0, %v2289_v3 }
 0x436   : > { %v1546_v19 = vpop.f32.mrb[24].mxu0 }
 0x437   : > { %v1547_v39 = vadd.f32 %v1546_v19, %v2291_v4  ;;  %v1548_v32 = vpop.f32.mrb[25].mxu0 }
 0x438   : > { %v1635_v43 = vpop.f32.mrb[24].mxu1  ;;  %v1549_v18 = vadd.f32 %v1548_v32, %v2293_v5 }
 0x439   : > { %v1658_v50 = vand.u32 2147483647, %v1547_v39  ;;  %v1636_v6 = vadd.f32 %v1635_v43, %v2297_v7  ;;  %v1637_v12 = vpop.f32.mrb[25].mxu1  ;;  %v1722_v24 = vand.u32 2147483648, %v1547_v39 }
 0x43a   : > { %v1659_v49 = vand.u32 2147483647, %v1549_v18  ;;  %v1723_v63 = vand.u32 2147483648, %v1549_v18  ;;  %v1638_v61 = vadd.f32 %v1637_v12, %v2299_v8  ;;  %v1552_v41 = vpop.f32.mrb[26].mxu0 }
 0x43b   : > { %v1674_v52 = vsub.f32 %v1658_v50, %v2326_v21  ;;  %v1660_v33 = vand.u32 2147483647, %v1636_v6  ;;  %v1724_v37 = vand.u32 2147483648, %v1636_v6  ;;  %v1553_v47 = vadd.f32 %v1552_v41, %v2301_v9  ;;  %v1554_v13 = vpop.f32.mrb[27].mxu0  ;;  %v3073_v41 = vld [vmem:[#allocation26_spill] sm:$0xff] }
 0x43c   : > { %v1675_v28 = vsub.f32 %v1659_v49, %v2326_v21  ;;  %v1661_v46 = vand.u32 2147483647, %v1638_v61  ;;  %v1725_v31 = vand.u32 2147483648, %v1638_v61  ;;  %v1641_v59 = vpop.f32.mrb[26].mxu1  ;;  %v2910_v17 = vadd.f32 %v1554_v13, %v2303_v10 }
 0x43d   : > { %v1690_v48 = vmax.f32 %v1674_v52, 0.0  ;;  %v1676_v45 = vsub.f32 %v1660_v33, %v2326_v21  ;;  %v1662_v26 = vand.u32 2147483647, %v1553_v47  ;;  %v1726_v30 = vand.u32 2147483648, %v1553_v47  ;;  %v1643_v14 = vpop.f32.mrb[27].mxu1 }
 0x43e   : > { %v1691_v53 = vmax.f32 %v1675_v28, 0.0  ;;  %v1677_v34 = vsub.f32 %v1661_v46, %v2326_v21  ;;  %v1642_v20 = vadd.f32 %v1641_v59, %v2305_v11  ;;  %v1663_v15 = vand.u32 2147483647, %v2910_v17  ;;  %v1558_v55 = vpop.f32.mrb[28].mxu0  ;;  %v3075_v59 = vld [vmem:[#allocation29_spill] sm:$0xff] }
 0x43f   : > { %v1754_v22 = vor.u32 %v1722_v24, %v1690_v48  ;;  %v1692_v40 = vmax.f32 %v1676_v45, 0.0  ;;  %v1678_v35 = vsub.f32 %v1662_v26, %v2326_v21  ;;  %v1727_v56 = vand.u32 2147483648, %v2910_v17  ;;  %v2918_v19 = vpop.f32.mrb[29].mxu0 }
 0x440   : > { %v1755_v39 = vor.u32 %v1723_v63, %v1691_v53  ;;  %v1693_v32 = vmax.f32 %v1677_v34, 0.0  ;;  %v1664_v43 = vand.u32 2147483647, %v1642_v20  ;;  %v1728_v18 = vand.u32 2147483648, %v1642_v20  ;;  %v1647_v50 = vpop.f32.mrb[28].mxu1  ;;  %v3074_v63 = vld [vmem:[#allocation15_spill] sm:$0xff] }
 0x441   : > { %v1786_v6 = vsub.f32 %v1754_v22, %v2745_v36  ;;  %1854 = vst [vmem:[#allocation10] sm:$0xff] %v1754_v22  ;;  %v1756_v12 = vor.u32 %v1724_v37, %v1692_v40  ;;  %v1694_v49 = vmax.f32 %v1678_v35, 0.0  ;;  %v1679_v61 = vsub.f32 %v1663_v15, %v2326_v21  ;;  %v2922_v24 = vpop.f32.mrb[29].mxu1  ;;  %v3076_v40 = vld [vmem:[#allocation27_spill] sm:$0xff] }
 0x442   : > { %v1787_v52 = vsub.f32 %v1755_v39, %v3073_v41  ;;  %1855 = vst [vmem:[#allocation10 + $0x8] sm:$0xff] %v1755_v39  ;;  %v1757_v33 = vor.u32 %v1725_v31, %v1693_v32  ;;  %v1680_v47 = vsub.f32 %v1664_v43, %v2326_v21  ;;  %v1644_v13 = vadd.f32 %v1643_v14, %v3074_v63  ;;  %v2927_v28 = vpop.f32.mrb[30].mxu0 }
 0x443   : > { %v1822_v46 = vmul.f32 %v2902_v25, %v1786_v6  ;;  %v1886_v36 = vmul.f32 %v1786_v6, %v1786_v6  ;;  %v1788_v37 = vsub.f32 %v1756_v12, %v3075_v59  ;;  %1856 = vst [vmem:[#allocation10 + $0x10] sm:$0xff] %v1756_v12  ;;  %v1758_v17 = vor.u32 %v1726_v30, %v1694_v49  ;;  %v2931_v48 = vpop.f32.mrb[31].mxu0 }
 0x444   : > { %v1823_v45 = vmul.f32 %v2902_v25, %v1787_v52  ;;  %v1887_v26 = vmul.f32 %v1787_v52, %v1787_v52  ;;  %v1789_v31 = vsub.f32 %v1757_v33, %v2772_v29  ;;  %1857 = vst [vmem:[#allocation10 + $0x18] sm:$0xff] %v1757_v33  ;;  %v1696_v53 = vmax.f32 %v1680_v47, 0.0  ;;  %v2935_v34 = vpop.f32.mrb[30].mxu1 }
 0x445   : > { %v1838_v14 = vadd.f32 %v1822_v46, %v1754_v22  ;;  %v1824_v20 = vmul.f32 %v2902_v25, %v1788_v37  ;;  %v1888_v15 = vmul.f32 %v1788_v37, %v1788_v37  ;;  %v1790_v35 = vsub.f32 %v1758_v17, %v3076_v40  ;;  %1858 = vst [vmem:[#allocation10 + $0x20] sm:$0xff] %v1758_v17  ;;  %v2939_v32 = vpop.f32.mrb[31].mxu1 }
 0x446   : > { %v1839_v30 = vadd.f32 %v1823_v45, %v1755_v39  ;;  %v1902_v43 = vadd.f32 %v1887_v26, %v1886_v36  ;;  %v1825_v6 = vmul.f32 %v2902_v25, %v1789_v31  ;;  %v1889_v49 = vmul.f32 %v1789_v31, %v1789_v31  ;;  %v3077_v36 = vld [vmem:[#allocation16_spill] sm:$0xff] }
 0x447   : > { %1870 = vst [vmem:[#allocation2] sm:$0xff] %v1838_v14  ;;  %v1840_v29 = vadd.f32 %v1824_v20, %v1756_v12  ;;  %v1826_v41 = vmul.f32 %v2902_v25, %v1790_v35  ;;  %v1890_v52 = vmul.f32 %v1790_v35, %v1790_v35  ;;  %v1760_v47 = vor.u32 %v1728_v18, %v1696_v53  ;;  %v3078_v14 = vld [vmem:[#allocation18_spill] sm:$0xff] }
 0x448   : > { %1871 = vst [vmem:[#allocation2 + $0x8] sm:$0xff] %v1839_v30  ;;  %v1841_v22 = vadd.f32 %v1825_v6, %v1757_v33  ;;  %v1903_v63 = vadd.f32 %v1902_v43, %v1888_v15  ;;  %v1695_v46 = vmax.f32 %v1679_v61, 0.0  ;;  %v1665_v59 = vand.u32 2147483647, %v1644_v13  ;;  %v3079_v15 = vld [vmem:[#allocation28_spill] sm:$0xff]  ;;  %v3080_v43 = vld [vmem:[#allocation17_spill] sm:$0xff] }
 0x449   : > { %1872 = vst [vmem:[#allocation2 + $0x10] sm:$0xff] %v1840_v29  ;;  %v1842_v37 = vadd.f32 %v1826_v41, %v1758_v17  ;;  %v1792_v40 = vsub.f32 %v1760_v47, %v2784_v27  ;;  %1860 = vst [vmem:[#allocation10 + $0x30] sm:$0xff] %v1760_v47  ;;  %v1729_v39 = vand.u32 2147483648, %v1644_v13  ;;  %v1559_v45 = vadd.f32 %v1558_v55, %v3077_v36 }
 0x44a   : > { %1873 = vst [vmem:[#allocation2 + $0x18] sm:$0xff] %v1841_v22  ;;  %v1904_v26 = vadd.f32 %v1903_v63, %v1889_v49  ;;  %v1759_v12 = vor.u32 %v1727_v56, %v1695_v46  ;;  %v1681_v31 = vsub.f32 %v1665_v59, %v2326_v21  ;;  %v1648_v18 = vadd.f32 %v1647_v50, %v3078_v14  ;;  %v3081_v46 = vld [vmem:[#allocation19_spill] sm:$0xff] }
 0x44b   : > { %1874 = vst [vmem:[#allocation2 + $0x20] sm:$0xff] %v1842_v37  ;;  %v1828_v33 = vmul.f32 %v2902_v25, %v1792_v40  ;;  %v1892_v61 = vmul.f32 %v1792_v40, %v1792_v40  ;;  %v1666_v53 = vand.u32 2147483647, %v1559_v45  ;;  %v1730_v20 = vand.u32 2147483648, %v1559_v45 }
 0x44c   : > { %v1905_v17 = vadd.f32 %v1904_v26, %v1890_v52  ;;  %v1791_v27 = vsub.f32 %v1759_v12, %v3079_v15  ;;  %1859 = vst [vmem:[#allocation10 + $0x28] sm:$0xff] %v1759_v12  ;;  %v1697_v13 = vmax.f32 %v1681_v31, 0.0  ;;  %v1668_v35 = vand.u32 2147483647, %v1648_v18 }
 0x44d   : > { %v1844_v55 = vadd.f32 %v1828_v33, %v1760_v47  ;;  %v1682_v30 = vsub.f32 %v1666_v53, %v2326_v21  ;;  %v1732_v56 = vand.u32 2147483648, %v1648_v18  ;;  %v1561_v6 = vadd.f32 %v2918_v19, %v3080_v43 }
 0x44e   : > { %v1827_v50 = vmul.f32 %v2902_v25, %v1791_v27  ;;  %v1891_v49 = vmul.f32 %v1791_v27, %v1791_v27  ;;  %v1761_v29 = vor.u32 %v1729_v39, %v1697_v13  ;;  %v1684_v41 = vsub.f32 %v1668_v35, %v2326_v21  ;;  %v3083_v13 = vld [vmem:[#allocation22_spill] sm:$0xff] }
 0x44f   : > { %1876 = vst [vmem:[#allocation2 + $0x30] sm:$0xff] %v1844_v55  ;;  %v1698_v52 = vmax.f32 %v1682_v30, 0.0  ;;  %v1667_v22 = vand.u32 2147483647, %v1561_v6  ;;  %v1731_v63 = vand.u32 2147483648, %v1561_v6  ;;  %v1650_v59 = vadd.f32 %v2922_v24, %v3081_v46 }
 0x450   : > { %v1843_v47 = vadd.f32 %v1827_v50, %v1759_v12  ;;  %v1906_v37 = vadd.f32 %v1905_v17, %v1891_v49  ;;  %v1793_v40 = vsub.f32 %v1761_v29, %v2794_v51  ;;  %1861 = vst [vmem:[#allocation10 + $0x38] sm:$0xff] %v1761_v29  ;;  %v1700_v36 = vmax.f32 %v1684_v41, 0.0  ;;  %v3082_v51 = vld [vmem:[#allocation20_spill] sm:$0xff] }
 0x451   : > { %v1762_v19 = vor.u32 %v1730_v20, %v1698_v52  ;;  %v1683_v45 = vsub.f32 %v1667_v22, %v2326_v21  ;;  %v1669_v26 = vand.u32 2147483647, %v1650_v59  ;;  %v1733_v39 = vand.u32 2147483648, %v1650_v59 }
 0x452   : > { %1875 = vst [vmem:[#allocation2 + $0x28] sm:$0xff] %v1843_v47  ;;  %v1829_v31 = vmul.f32 %v2902_v25, %v1793_v40  ;;  %v1893_v14 = vmul.f32 %v1793_v40, %v1793_v40  ;;  %v1907_v18 = vadd.f32 %v1906_v37, %v1892_v61  ;;  %v1764_v33 = vor.u32 %v1732_v56, %v1700_v36 }
 0x453   : > { %v1794_v53 = vsub.f32 %v1762_v19, %v2826_v23  ;;  %1862 = vst [vmem:[#allocation10 + $0x40] sm:$0xff] %v1762_v19  ;;  %v1699_v24 = vmax.f32 %v1683_v45, 0.0  ;;  %v1685_v12 = vsub.f32 %v1669_v26, %v2326_v21  ;;  %v1565_v17 = vadd.f32 %v2927_v28, %v3082_v51 }
 0x454   : > { %v1845_v20 = vadd.f32 %v1829_v31, %v1761_v29  ;;  %v1908_v15 = vadd.f32 %v1907_v18, %v1893_v14  ;;  %v1796_v27 = vsub.f32 %v1764_v33, %v2836_v60  ;;  %1864 = vst [vmem:[#allocation10 + $0x50] sm:$0xff] %v1764_v33  ;;  %v1654_v35 = vadd.f32 %v2935_v34, %v3083_v13 }
 0x455   : > { %v1830_v61 = vmul.f32 %v2902_v25, %v1794_v53  ;;  %v1894_v55 = vmul.f32 %v1794_v53, %v1794_v53  ;;  %v1763_v30 = vor.u32 %v1731_v63, %v1699_v24  ;;  %v1701_v23 = vmax.f32 %v1685_v12, 0.0 }
 0x456   : > { %1877 = vst [vmem:[#allocation2 + $0x38] sm:$0xff] %v1845_v20  ;;  %v1832_v56 = vmul.f32 %v2902_v25, %v1796_v27  ;;  %v1670_v43 = vand.u32 2147483647, %v1565_v17  ;;  %v1734_v41 = vand.u32 2147483648, %v1565_v17  ;;  %v1672_v34 = vand.u32 2147483647, %v1654_v35 }
 0x457   : > { %v1846_v6 = vadd.f32 %v1830_v61, %v1762_v19  ;;  %v1909_v50 = vadd.f32 %v1908_v15, %v1894_v55  ;;  %v1795_v28 = vsub.f32 %v1763_v30, %v2822_v16  ;;  %1863 = vst [vmem:[#allocation10 + $0x48] sm:$0xff] %v1763_v30  ;;  %v1765_v49 = vor.u32 %v1733_v39, %v1701_v23 }
 0x458   : > { %v1848_v60 = vadd.f32 %v1832_v56, %v1764_v33  ;;  %v1686_v29 = vsub.f32 %v1670_v43, %v2326_v21  ;;  %v1567_v63 = vadd.f32 %v2931_v48, %v3072_v44  ;;  %v1688_v16 = vsub.f32 %v1672_v34, %v2326_v21 }
 0x459   : > { %1878 = vst [vmem:[#allocation2 + $0x40] sm:$0xff] %v1846_v6  ;;  %v1831_v52 = vmul.f32 %v2902_v25, %v1795_v28  ;;  %v1797_v22 = vsub.f32 %v1765_v49, %v2830_v42  ;;  %1865 = vst [vmem:[#allocation10 + $0x58] sm:$0xff] %v1765_v49  ;;  %v1736_v59 = vand.u32 2147483648, %v1654_v35  ;;  %v1656_v47 = vadd.f32 %v2939_v32, %v3059_v58 }
 0x45a   : > { %1880 = vst [vmem:[#allocation2 + $0x50] sm:$0xff] %v1848_v60  ;;  %v1702_v46 = vmax.f32 %v1686_v29, 0.0  ;;  %v1895_v40 = vmul.f32 %v1795_v28, %v1795_v28  ;;  %v1671_v19 = vand.u32 2147483647, %v1567_v63  ;;  %v1896_v45 = vmul.f32 %v1796_v27, %v1796_v27 }
 0x45b   : > { %v1847_v37 = vadd.f32 %v1831_v52, %v1763_v30  ;;  %v1833_v36 = vmul.f32 %v2902_v25, %v1797_v22  ;;  %v1704_v42 = vmax.f32 %v1688_v16, 0.0  ;;  %v1673_v39 = vand.u32 2147483647, %v1656_v47 }
 0x45c   : > { %v1766_v26 = vor.u32 %v1734_v41, %v1702_v46  ;;  %v1687_v44 = vsub.f32 %v1671_v19, %v2326_v21  ;;  %v1735_v48 = vand.u32 2147483648, %v1567_v63  ;;  %v1910_v14 = vadd.f32 %v1909_v50, %v1895_v40 }
 0x45d   : > { %1879 = vst [vmem:[#allocation2 + $0x48] sm:$0xff] %v1847_v37  ;;  %v1849_v31 = vadd.f32 %v1833_v36, %v1765_v49  ;;  %v1768_v33 = vor.u32 %v1736_v59, %v1704_v42  ;;  %v1689_v58 = vsub.f32 %v1673_v39, %v2326_v21  ;;  %v1737_v32 = vand.u32 2147483648, %v1656_v47 }
 0x45e   : > { %v1798_v18 = vsub.f32 %v1766_v26, %v2828_v38  ;;  %1866 = vst [vmem:[#allocation10 + $0x60] sm:$0xff] %v1766_v26  ;;  %v1703_v53 = vmax.f32 %v1687_v44, 0.0  ;;  %v1897_v24 = vmul.f32 %v1797_v22, %v1797_v22  ;;  %v1911_v12 = vadd.f32 %v1910_v14, %v1896_v45 }
 0x45f   : > { %1881 = vst [vmem:[#allocation2 + $0x58] sm:$0xff] %v1849_v31  ;;  %v1705_v17 = vmax.f32 %v1689_v58, 0.0  ;;  %v1800_v20 = vsub.f32 %v1768_v33, %v2832_v54  ;;  %1868 = vst [vmem:[#allocation10 + $0x70] sm:$0xff] %v1768_v33 }
 0x460   : > { %v1834_v51 = vmul.f32 %v2902_v25, %v1798_v18  ;;  %v1767_v15 = vor.u32 %v1735_v48, %v1703_v53  ;;  %v1898_v27 = vmul.f32 %v1798_v18, %v1798_v18  ;;  %v1912_v13 = vadd.f32 %v1911_v12, %v1897_v24 }
 0x461   : > { %v1769_v38 = vor.u32 %v1737_v32, %v1705_v17  ;;  %v1836_v61 = vmul.f32 %v2902_v25, %v1800_v20  ;;  %v1900_v28 = vmul.f32 %v1800_v20, %v1800_v20 }
 0x462   : > { %v1850_v35 = vadd.f32 %v1834_v51, %v1766_v26  ;;  %1867 = vst [vmem:[#allocation10 + $0x68] sm:$0xff] %v1767_v15  ;;  %v1799_v55 = vsub.f32 %v1767_v15, %v2850_v62  ;;  %v1913_v30 = vadd.f32 %v1912_v13, %v1898_v27 }
 0x463   : > { %v1801_v23 = vsub.f32 %v1769_v38, %v2859_v57  ;;  %v1852_v56 = vadd.f32 %v1836_v61, %v1768_v33  ;;  %1869 = vst [vmem:[#allocation10 + $0x78] sm:$0xff] %v1769_v38 }
 0x464   : > { %1882 = vst [vmem:[#allocation2 + $0x60] sm:$0xff] %v1850_v35  ;;  %v1835_v54 = vmul.f32 %v2902_v25, %v1799_v55  ;;  %v1899_v43 = vmul.f32 %v1799_v55, %v1799_v55 }
 0x465   : > { %v1837_v6 = vmul.f32 %v2902_v25, %v1801_v23  ;;  %1884 = vst [vmem:[#allocation2 + $0x70] sm:$0xff] %v1852_v56  ;;  %v1901_v62 = vmul.f32 %v1801_v23, %v1801_v23 }
 0x466   : > { %v1851_v50 = vadd.f32 %v1835_v54, %v1767_v15  ;;  %v1914_v49 = vadd.f32 %v1913_v30, %v1899_v43 }
 0x467   : > { %v1853_v60 = vadd.f32 %v1837_v6, %v1769_v38 }
 0x468   : > { %1883 = vst [vmem:[#allocation2 + $0x68] sm:$0xff] %v1851_v50  ;;  %v1915_v29 = vadd.f32 %v1914_v49, %v1900_v28 }
 0x469   : > { %1885 = vst [vmem:[#allocation2 + $0x78] sm:$0xff] %v1853_v60 }
 0x46a   : > { %v1916_v41 = vadd.f32 %v1915_v29, %v1901_v62 }
 0x46c   : > { %1917 = vadd.xlane.f32.xlu0 %v1916_v41 }
 0x4f9   : > { %v1918_v57 = vpop.xlane.xlu0 %1917 }
 0x4fa   : > { %v1919_v34 = vrot.slane %v1918_v57, 4 }
 0x4fc   : > { %v1920_v52 = vadd.f32 %v1919_v34, %v1918_v57 }
 0x4fe   : > { %v1921_v22 = vrot.slane %v1920_v52, 2 }
 0x500   : > { %v1922_v63 = vadd.f32 %v1921_v22, %v1920_v52 }
 0x502   : > { %v1923_v46 = vrot.slane %v1922_v63, 1 }
 0x504   : > { %v1924_v25 = vadd.f32 %v1923_v46, %v1922_v63 }
 0x506   : > { %2075 = vpush %v1924_v25 }
 0x537   : > { %s2076_s28 = spop %2075 }
 0x538   : > { %p1927_p7 = scmp.lt.f32.partialorder %s2076_s28, %s2295_s2 }
 0x53a   : > { %p116_p9 = pneg %p1927_p7 }
 0x53c   : > { %p117_p10 = pnand %p116_p9, %p115_p8 }
 0x53d   :  { %s2230_s29 = smov (%p117_p10), [#allocation10]  }
 0x53e   :  { %120 = sbr.rel (!%p117_p10) target bundleno = 77 (0x4d), region = 51  ;;  %s1933_s30 = sshll.u32 (%p117_p10), %s2230_s29, 4  ;;  %s1934_s30 = int_to_ptr.vmem [resolvable:$true] %s1933_s30 }
 0x53f   :  { %s2175_s4 = scalar_lea.vmem (%p117_p10), %s1934_s30, 2048  ;;  %p2180_p12 = scmp.lt.s32.totalorder (%p117_p10), %s1934_s30, %s1934_s30 }
 0x540   :  { %p2176_p11 = scmp.ne.s32.totalorder (%p117_p10), %s1934_s30, %s2175_s4  ;;  %p2181_p13 = scmp.lt.s32.totalorder (%p117_p10), %s2175_s4, %s2175_s4 }
 0x542   :  { %p2182_p0 = por (%p117_p10), %p2181_p13, %p2180_p12 }
 0x544   :  { %p2183_p1 = pnand (%p117_p10), %p2182_p0, %p2176_p11 }
 0x546   :  { %2186 = shalt.err (!%p2183_p1)
}
 0x547   :  { %s2187_s7 = scalar_lea.hbm %s3013_s3, 2048 }
 0x548   :  { %p2188_p2 = scmp.ne.s32.totalorder %s3013_s3, %s2187_s7  ;;  %p2191_p3 = scmp.lt.u32.totalorder %s2187_s7, %s3013_s3 }
 0x54a   :  { %p2193_p4 = pnand %p2191_p3, %p2188_p2 }
 0x54c   :  { %2196 = shalt.err (!%p2193_p4)
}
 0x54d   :  { %1939 = dma.vmem_to_hbm [thread:$0]  %s1934_s30, 2048, %s3013_s3, [#allocation5], %s2225_s0, %s2225_s0, %s2226_s9  }
 0x54e   :  { %2211 = dma.done.wait [#allocation5], 2048  }
 0x54f   :  { %2212 = vsyncadd [#allocation5], 4294965248 }
 0x550   :  { %1943 = vsyncpa [#allocation4], 1 }
 0x551   :  { %1944 = vsyncpa [#allocation8], 1 }
 0x552   :  { %1945 = vsyncpa [#allocation5], 1 }
 0x553   :  { %1946 = vsyncpa [#allocation6], 1 }

</bundles_post_ra>
